<compile_context>
chip_gen: v7x
topology: tpu7x:2x2x1
jax: 0.10.0
libtpu: 0.0.40
codegen_flags: <defaults>
</compile_context>

<pallas_src>
import functools

import jax
import jax.numpy as jnp
from jax import lax
from jax.experimental import pallas as pl
from jax.experimental.pallas import tpu as pltpu


# ---------------------------------------------------------------------------
# Fused kernel: one grid step processes TB batch elements (statically unrolled).
#   x_ref  : (TB, C, P)       input block (P = H*W, lanes)
#   w1..w3 : (16,C),(32,16),(64,32)   conv 1x1 weights (VMEM-resident)
#   b1..b3 : (16,1),(32,1),(64,1)     conv biases (broadcast over lanes)
#   wc_ref : (O+1, 64, P)     [actor head ; value head] weights, PyTorch flatten order
#   bc_ref : (1, O+1)         combined bias row
#   probs_ref : (TB, O)       softmax(actor logits)
#   value_ref : (TB, 1)       critic value
# ---------------------------------------------------------------------------
def a2c_fused_kernel(x_ref, w1_ref, b1_ref, w2_ref, b2_ref, w3_ref, b3_ref,
                     wc_ref, bc_ref, probs_ref, value_ref, *, num_actions, tb):
    # Small weights / biases: load once per grid step, reuse across the batch unroll.
    w1 = w1_ref[...]
    b1 = b1_ref[...]
    w2 = w2_ref[...]
    b2 = b2_ref[...]
    w3 = w3_ref[...]
    b3 = b3_ref[...]
    bc = bc_ref[...]

    d3 = w3.shape[0]                                   # 64 feature channels
    ones_row = jnp.ones((1, d3), jnp.float32)          # hoisted (no per-iter broadcast)

    for b in range(tb):                                # tb is static & small -> unrolled
        xb = x_ref[b]                                  # (C, P)

        # 1x1 conv stack == channel-dim matmuls, spatial dim stays lane-dense.
        h = jnp.dot(w1, xb, preferred_element_type=jnp.float32) + b1
        h = jnp.maximum(h, 0.0)                        # (16, P)
        h = jnp.dot(w2, h, preferred_element_type=jnp.float32) + b2
        h = jnp.maximum(h, 0.0)                        # (32, P)
        ft = jnp.dot(w3, h, preferred_element_type=jnp.float32) + b3
        ft = jnp.maximum(ft, 0.0)                      # (64, P)  == NCHW feature block

        # Combined actor+critic head: s[o] = sum_{d,p} wc[o,d,p] * ft[d,p]  (+ bias).
        # VPU multiply -> lane reduce -> ones-row matmul (contracts the channel axis
        # and lands the result as a lane-dense (1, O+1) row, no transpose anywhere).
        prod = wc_ref[...] * ft[None, :, :]            # (O+1, 64, P)
        s_od = jnp.sum(prod, axis=2)                   # (O+1, 64)
        s_row = lax.dot_general(ones_row, s_od,
                                dimension_numbers=(((1,), (1,)), ((), ())),
                                preferred_element_type=jnp.float32)   # (1, O+1)
        s_row = s_row + bc

        logits = s_row[:, :num_actions]                # (1, O)
        value = s_row[:, num_actions:]                 # (1, 1)

        # softmax(dim=-1), denominator reciprocal on the EUP.
        m = jnp.max(logits, axis=1, keepdims=True)
        e = jnp.exp(logits - m)
        denom = jnp.sum(e, axis=1, keepdims=True)
        probs = e * pl.reciprocal(denom, approx=True)

        probs_ref[pl.ds(b, 1), :] = probs
        value_ref[pl.ds(b, 1), :] = value


# ---------------------------------------------------------------------------
# Parameters: torch-shaped init + packing into kernel operands.
# ---------------------------------------------------------------------------
def init_params(key, channels, outputs, dense):
    ks = jax.random.split(key, 10)
    return dict(
        conv1_w=0.1 * jax.random.normal(ks[0], (16, channels, 1, 1), jnp.float32),
        conv1_b=0.1 * jax.random.normal(ks[1], (16,), jnp.float32),
        conv2_w=0.1 * jax.random.normal(ks[2], (32, 16, 1, 1), jnp.float32),
        conv2_b=0.1 * jax.random.normal(ks[3], (32,), jnp.float32),
        conv3_w=0.1 * jax.random.normal(ks[4], (64, 32, 1, 1), jnp.float32),
        conv3_b=0.1 * jax.random.normal(ks[5], (64,), jnp.float32),
        head_w=0.01 * jax.random.normal(ks[6], (outputs, dense), jnp.float32),
        head_b=0.01 * jax.random.normal(ks[7], (outputs,), jnp.float32),
        value_w=0.01 * jax.random.normal(ks[8], (1, dense), jnp.float32),
        value_b=0.01 * jax.random.normal(ks[9], (1,), jnp.float32),
    )


def pack_params(p, height, width):
    """PyTorch-shaped params -> kernel operands (pure host-side reshapes/concat)."""
    P = height * width
    O = p["head_w"].shape[0]
    # PyTorch flatten index k = d*P + p, so a plain reshape gives wc[o, d, p].
    wc = jnp.concatenate(
        [p["head_w"].reshape(O, 64, P), p["value_w"].reshape(1, 64, P)], axis=0)
    bc = jnp.concatenate([p["head_b"], p["value_b"]]).reshape(1, O + 1)
    return dict(
        w1=p["conv1_w"][:, :, 0, 0], b1=p["conv1_b"].reshape(16, 1),
        w2=p["conv2_w"][:, :, 0, 0], b2=p["conv2_b"].reshape(32, 1),
        w3=p["conv3_w"][:, :, 0, 0], b3=p["conv3_b"].reshape(64, 1),
        wc=wc, bc=bc,
    )


# ---------------------------------------------------------------------------
# Forward wrapper: one fused pallas_call, batch-tiled grid, no wrapper transposes
# (only free reshapes; optional zero-pad of the batch to a multiple of the tile).
# ---------------------------------------------------------------------------
@functools.partial(jax.jit, static_argnames=("outputs",))
def a2c_forward(x_nchw, kp, *, outputs):
    B, C, H, W = x_nchw.shape
    P = H * W
    O1 = outputs + 1

    TB = B if B <= 8 else 8                  # batch elements per grid step
    Bp = pl.cdiv(B, TB) * TB                 # padded batch (multiple of TB)

    x3 = x_nchw.reshape(B, C, P)             # free view of NCHW
    if Bp != B:
        x3 = jnp.pad(x3, ((0, Bp - B), (0, 0), (0, 0)))

    kernel = functools.partial(a2c_fused_kernel, num_actions=outputs, tb=TB)
    probs, value = pl.pallas_call(
        kernel,
        grid=(Bp // TB,),
        out_shape=(
            jax.ShapeDtypeStruct((Bp, outputs), jnp.float32),
            jax.ShapeDtypeStruct((Bp, 1), jnp.float32),
        ),
        in_specs=[
            pl.BlockSpec((TB, C, P), lambda i: (i, 0, 0)),     # per-step input block
            pl.BlockSpec((16, C), lambda i: (0, 0)),           # resident weights
            pl.BlockSpec((16, 1), lambda i: (0, 0)),
            pl.BlockSpec((32, 16), lambda i: (0, 0)),
            pl.BlockSpec((32, 1), lambda i: (0, 0)),
            pl.BlockSpec((64, 32), lambda i: (0, 0)),
            pl.BlockSpec((64, 1), lambda i: (0, 0)),
            pl.BlockSpec((O1, 64, P), lambda i: (0, 0, 0)),    # combined head weights
            pl.BlockSpec((1, O1), lambda i: (0, 0)),
        ],
        out_specs=(
            pl.BlockSpec((TB, outputs), lambda i: (i, 0)),
            pl.BlockSpec((TB, 1), lambda i: (i, 0)),
        ),
        compiler_params=pltpu.CompilerParams(
            dimension_semantics=("parallel",)),   # batch tiles shard across TCs (v7x)
    )(x3, kp["w1"], kp["b1"], kp["w2"], kp["b2"], kp["w3"], kp["b3"],
      kp["wc"], kp["bc"])

    return probs[:B], value[:B]


# Pure-JAX reference implementing the PyTorch module math directly.
def a2c_reference(x_nchw, p):
    B = x_nchw.shape[0]

    def conv1x1_relu(x, w, b):  # x: (B, Cin, H, W); w: (Cout, Cin, 1, 1)
        y = jnp.einsum("oc,bchw->bohw", w[:, :, 0, 0], x) + b[None, :, None, None]
        return jnp.maximum(y, 0.0)

    h = conv1x1_relu(x_nchw, p["conv1_w"], p["conv1_b"])
    h = conv1x1_relu(h, p["conv2_w"], p["conv2_b"])
    h = conv1x1_relu(h, p["conv3_w"], p["conv3_b"])
    flat = h.reshape(B, -1)                                   # x.view(B, -1) on NCHW
    logits = flat @ p["head_w"].T + p["head_b"]
    probs = jax.nn.softmax(logits, axis=-1)
    value = flat @ p["value_w"].T + p["value_b"]
    return probs, value


if __name__ == "__main__":
    B, C, H, W, OUT = 2, 4, 16, 16, 4

    key = jax.random.PRNGKey(0)
    k_x, k_p = jax.random.split(key)
    x = jax.random.normal(k_x, (B, C, H, W), jnp.float32)
    params = init_params(k_p, C, OUT, 64 * H * W)
    kparams = pack_params(params, H, W)

    probs, value = a2c_forward(x, kparams, outputs=OUT)
    jax.block_until_ready((probs, value))

    ref_probs, ref_value = a2c_reference(x, params)
    assert probs.shape == (B, OUT) and value.shape == (B, 1)
    # approx reciprocal in the in-kernel softmax -> slightly looser tolerances
    assert jnp.allclose(jnp.sum(probs, axis=-1), 1.0, atol=5e-3)
    assert jnp.allclose(probs, ref_probs, atol=5e-3)
    assert jnp.allclose(value, ref_value, atol=1e-3)

    print("KERNEL_OK")
</pallas_src>

<mosaic_0001>
module attributes {stable_mosaic.version = 11 : i64} {
  func.func @a2c_fused_kernel(%arg0: i32, %arg1: memref<2x4x256xf32, #tpu.memory_space<vmem>>, %arg2: memref<16x4xf32, #tpu.memory_space<vmem>>, %arg3: memref<16x1xf32, #tpu.memory_space<vmem>>, %arg4: memref<32x16xf32, #tpu.memory_space<vmem>>, %arg5: memref<32x1xf32, #tpu.memory_space<vmem>>, %arg6: memref<64x32xf32, #tpu.memory_space<vmem>>, %arg7: memref<64x1xf32, #tpu.memory_space<vmem>>, %arg8: memref<5x64x256xf32, #tpu.memory_space<vmem>>, %arg9: memref<1x5xf32, #tpu.memory_space<vmem>>, %arg10: memref<2x4xf32, #tpu.memory_space<vmem>>, %arg11: memref<2x1xf32, #tpu.memory_space<vmem>>) attributes {dimension_semantics = [#tpu.dimension_semantics<parallel>], iteration_bounds = array<i64: 1>, scalar_prefetch = 0 : i64, scratch_operands = 0 : i64, tpu.core_type = #tpu.core_type<tc>, window_params = [{transform_indices = @transform_0, window_bounds = array<i64: 2, 4, 256>}, {pipeline_mode = #tpu.pipeline_mode<synchronous>, transform_indices = @transform_1, window_bounds = array<i64: 16, 4>}, {pipeline_mode = #tpu.pipeline_mode<synchronous>, transform_indices = @transform_2, window_bounds = array<i64: 16, 1>}, {pipeline_mode = #tpu.pipeline_mode<synchronous>, transform_indices = @transform_3, window_bounds = array<i64: 32, 16>}, {pipeline_mode = #tpu.pipeline_mode<synchronous>, transform_indices = @transform_4, window_bounds = array<i64: 32, 1>}, {pipeline_mode = #tpu.pipeline_mode<synchronous>, transform_indices = @transform_5, window_bounds = array<i64: 64, 32>}, {pipeline_mode = #tpu.pipeline_mode<synchronous>, transform_indices = @transform_6, window_bounds = array<i64: 64, 1>}, {pipeline_mode = #tpu.pipeline_mode<synchronous>, transform_indices = @transform_7, window_bounds = array<i64: 5, 64, 256>}, {pipeline_mode = #tpu.pipeline_mode<synchronous>, transform_indices = @transform_8, window_bounds = array<i64: 1, 5>}, {transform_indices = @transform_9, window_bounds = array<i64: 2, 4>}, {transform_indices = @transform_10, window_bounds = array<i64: 2, 1>}]} {
    %c0 = arith.constant 0 : index
    %c0_0 = arith.constant 0 : index
    %0 = vector.load %arg2[%c0, %c0_0] : memref<16x4xf32, #tpu.memory_space<vmem>>, vector<16x4xf32>
    %c0_1 = arith.constant 0 : index
    %c0_2 = arith.constant 0 : index
    %1 = vector.load %arg3[%c0_1, %c0_2] : memref<16x1xf32, #tpu.memory_space<vmem>>, vector<16x1xf32>
    %c0_3 = arith.constant 0 : index
    %c0_4 = arith.constant 0 : index
    %2 = vector.load %arg4[%c0_3, %c0_4] : memref<32x16xf32, #tpu.memory_space<vmem>>, vector<32x16xf32>
    %c0_5 = arith.constant 0 : index
    %c0_6 = arith.constant 0 : index
    %3 = vector.load %arg5[%c0_5, %c0_6] : memref<32x1xf32, #tpu.memory_space<vmem>>, vector<32x1xf32>
    %c0_7 = arith.constant 0 : index
    %c0_8 = arith.constant 0 : index
    %4 = vector.load %arg6[%c0_7, %c0_8] : memref<64x32xf32, #tpu.memory_space<vmem>>, vector<64x32xf32>
    %c0_9 = arith.constant 0 : index
    %c0_10 = arith.constant 0 : index
    %5 = vector.load %arg7[%c0_9, %c0_10] : memref<64x1xf32, #tpu.memory_space<vmem>>, vector<64x1xf32>
    %c0_11 = arith.constant 0 : index
    %c0_12 = arith.constant 0 : index
    %6 = vector.load %arg9[%c0_11, %c0_12] : memref<1x5xf32, #tpu.memory_space<vmem>>, vector<1x5xf32>
    %cst = arith.constant 1.000000e+00 : f32
    %7 = vector.broadcast %cst : f32 to vector<1x64xf32>
    %c0_13 = arith.constant 0 : index
    %c0_14 = arith.constant 0 : index
    %c0_15 = arith.constant 0 : index
    %8 = vector.load %arg1[%c0_13, %c0_14, %c0_15] : memref<2x4x256xf32, #tpu.memory_space<vmem>>, vector<1x4x256xf32>
    %9 = vector.shape_cast %8 : vector<1x4x256xf32> to vector<4x256xf32>
    %cst_16 = arith.constant dense<0.000000e+00> : vector<16x256xf32>
    %10 = tpu.matmul %0, %9, %cst_16 {dimension_numbers = #tpu.dot_dimension_numbers<[1], [0], [0], [1], [0, 0, 1, 1], [], []>} : vector<16x4xf32>, vector<4x256xf32>, vector<16x256xf32> -> vector<16x256xf32>
    %11 = vector.broadcast %1 : vector<16x1xf32> to vector<16x256xf32>
    %12 = arith.addf %10, %11 : vector<16x256xf32>
    %cst_17 = arith.constant 0.000000e+00 : f32
    %13 = vector.broadcast %cst_17 : f32 to vector<16x256xf32>
    %14 = arith.maximumf %12, %13 : vector<16x256xf32>
    %cst_18 = arith.constant dense<0.000000e+00> : vector<32x256xf32>
    %15 = tpu.matmul %2, %14, %cst_18 {dimension_numbers = #tpu.dot_dimension_numbers<[1], [0], [0], [1], [0, 0, 1, 1], [], []>} : vector<32x16xf32>, vector<16x256xf32>, vector<32x256xf32> -> vector<32x256xf32>
    %16 = vector.broadcast %3 : vector<32x1xf32> to vector<32x256xf32>
    %17 = arith.addf %15, %16 : vector<32x256xf32>
    %cst_19 = arith.constant 0.000000e+00 : f32
    %18 = vector.broadcast %cst_19 : f32 to vector<32x256xf32>
    %19 = arith.maximumf %17, %18 : vector<32x256xf32>
    %cst_20 = arith.constant dense<0.000000e+00> : vector<64x256xf32>
    %20 = tpu.matmul %4, %19, %cst_20 {dimension_numbers = #tpu.dot_dimension_numbers<[1], [0], [0], [1], [0, 0, 1, 1], [], []>} : vector<64x32xf32>, vector<32x256xf32>, vector<64x256xf32> -> vector<64x256xf32>
    %21 = vector.broadcast %5 : vector<64x1xf32> to vector<64x256xf32>
    %22 = arith.addf %20, %21 : vector<64x256xf32>
    %cst_21 = arith.constant 0.000000e+00 : f32
    %23 = vector.broadcast %cst_21 : f32 to vector<64x256xf32>
    %24 = arith.maximumf %22, %23 : vector<64x256xf32>
    %c0_22 = arith.constant 0 : index
    %c0_23 = arith.constant 0 : index
    %c0_24 = arith.constant 0 : index
    %25 = vector.load %arg8[%c0_22, %c0_23, %c0_24] : memref<5x64x256xf32, #tpu.memory_space<vmem>>, vector<5x64x256xf32>
    %26 = vector.shape_cast %24 : vector<64x256xf32> to vector<1x64x256xf32>
    %27 = vector.broadcast %26 : vector<1x64x256xf32> to vector<5x64x256xf32>
    %28 = arith.mulf %25, %27 : vector<5x64x256xf32>
    %cst_25 = arith.constant dense<0.000000e+00> : vector<5x64xf32>
    %29 = vector.multi_reduction <add>, %28, %cst_25 [2] : vector<5x64x256xf32> to vector<5x64xf32>
    %cst_26 = arith.constant dense<0.000000e+00> : vector<1x5xf32>
    %30 = tpu.matmul %7, %29, %cst_26 {dimension_numbers = #tpu.dot_dimension_numbers<[1], [1], [0], [0], [0, 0, 1, 0], [], []>} : vector<1x64xf32>, vector<5x64xf32>, vector<1x5xf32> -> vector<1x5xf32>
    %31 = arith.addf %30, %6 : vector<1x5xf32>
    %32 = vector.extract_strided_slice %31 {offsets = [0, 0], sizes = [1, 4], strides = [1, 1]} : vector<1x5xf32> to vector<1x4xf32>
    %33 = vector.extract_strided_slice %31 {offsets = [0, 4], sizes = [1, 1], strides = [1, 1]} : vector<1x5xf32> to vector<1x1xf32>
    %cst_27 = arith.constant dense<0xFF800000> : vector<1xf32>
    %34 = vector.multi_reduction <maximumf>, %32, %cst_27 [1] : vector<1x4xf32> to vector<1xf32>
    %35 = vector.shape_cast %34 : vector<1xf32> to vector<1x1xf32>
    %36 = vector.broadcast %35 : vector<1x1xf32> to vector<1x4xf32>
    %37 = arith.subf %32, %36 : vector<1x4xf32>
    %38 = math.exp %37 : vector<1x4xf32>
    %cst_28 = arith.constant dense<0.000000e+00> : vector<1xf32>
    %39 = vector.multi_reduction <add>, %38, %cst_28 [1] : vector<1x4xf32> to vector<1xf32>
    %40 = vector.shape_cast %39 : vector<1xf32> to vector<1x1xf32>
    %41 = tpu.reciprocal %40 {approx = true} : vector<1x1xf32> -> vector<1x1xf32>
    %42 = vector.broadcast %41 : vector<1x1xf32> to vector<1x4xf32>
    %43 = arith.mulf %38, %42 : vector<1x4xf32>
    %c0_29 = arith.constant 0 : index
    %c0_30 = arith.constant 0 : index
    %44 = vector.load %arg10[%c0_29, %c0_30] : memref<2x4xf32, #tpu.memory_space<vmem>>, vector<1x4xf32>
    tpu.vector_store %arg10[%c0_29, %c0_30], %43 {strides = array<i32>} : memref<2x4xf32, #tpu.memory_space<vmem>>, vector<1x4xf32>,
    %c0_31 = arith.constant 0 : index
    %c0_32 = arith.constant 0 : index
    %45 = vector.load %arg11[%c0_31, %c0_32] : memref<2x1xf32, #tpu.memory_space<vmem>>, vector<1x1xf32>
    tpu.vector_store %arg11[%c0_31, %c0_32], %33 {strides = array<i32>} : memref<2x1xf32, #tpu.memory_space<vmem>>, vector<1x1xf32>,
    %c1 = arith.constant 1 : index
    %c0_33 = arith.constant 0 : index
    %c0_34 = arith.constant 0 : index
    %46 = vector.load %arg1[%c1, %c0_33, %c0_34] : memref<2x4x256xf32, #tpu.memory_space<vmem>>, vector<1x4x256xf32>
    %47 = vector.shape_cast %46 : vector<1x4x256xf32> to vector<4x256xf32>
    %cst_35 = arith.constant dense<0.000000e+00> : vector<16x256xf32>
    %48 = tpu.matmul %0, %47, %cst_35 {dimension_numbers = #tpu.dot_dimension_numbers<[1], [0], [0], [1], [0, 0, 1, 1], [], []>} : vector<16x4xf32>, vector<4x256xf32>, vector<16x256xf32> -> vector<16x256xf32>
    %49 = vector.broadcast %1 : vector<16x1xf32> to vector<16x256xf32>
    %50 = arith.addf %48, %49 : vector<16x256xf32>
    %cst_36 = arith.constant 0.000000e+00 : f32
    %51 = vector.broadcast %cst_36 : f32 to vector<16x256xf32>
    %52 = arith.maximumf %50, %51 : vector<16x256xf32>
    %cst_37 = arith.constant dense<0.000000e+00> : vector<32x256xf32>
    %53 = tpu.matmul %2, %52, %cst_37 {dimension_numbers = #tpu.dot_dimension_numbers<[1], [0], [0], [1], [0, 0, 1, 1], [], []>} : vector<32x16xf32>, vector<16x256xf32>, vector<32x256xf32> -> vector<32x256xf32>
    %54 = vector.broadcast %3 : vector<32x1xf32> to vector<32x256xf32>
    %55 = arith.addf %53, %54 : vector<32x256xf32>
    %cst_38 = arith.constant 0.000000e+00 : f32
    %56 = vector.broadcast %cst_38 : f32 to vector<32x256xf32>
    %57 = arith.maximumf %55, %56 : vector<32x256xf32>
    %cst_39 = arith.constant dense<0.000000e+00> : vector<64x256xf32>
    %58 = tpu.matmul %4, %57, %cst_39 {dimension_numbers = #tpu.dot_dimension_numbers<[1], [0], [0], [1], [0, 0, 1, 1], [], []>} : vector<64x32xf32>, vector<32x256xf32>, vector<64x256xf32> -> vector<64x256xf32>
    %59 = vector.broadcast %5 : vector<64x1xf32> to vector<64x256xf32>
    %60 = arith.addf %58, %59 : vector<64x256xf32>
    %cst_40 = arith.constant 0.000000e+00 : f32
    %61 = vector.broadcast %cst_40 : f32 to vector<64x256xf32>
    %62 = arith.maximumf %60, %61 : vector<64x256xf32>
    %c0_41 = arith.constant 0 : index
    %c0_42 = arith.constant 0 : index
    %c0_43 = arith.constant 0 : index
    %63 = vector.load %arg8[%c0_41, %c0_42, %c0_43] : memref<5x64x256xf32, #tpu.memory_space<vmem>>, vector<5x64x256xf32>
    %64 = vector.shape_cast %62 : vector<64x256xf32> to vector<1x64x256xf32>
    %65 = vector.broadcast %64 : vector<1x64x256xf32> to vector<5x64x256xf32>
    %66 = arith.mulf %63, %65 : vector<5x64x256xf32>
    %cst_44 = arith.constant dense<0.000000e+00> : vector<5x64xf32>
    %67 = vector.multi_reduction <add>, %66, %cst_44 [2] : vector<5x64x256xf32> to vector<5x64xf32>
    %cst_45 = arith.constant dense<0.000000e+00> : vector<1x5xf32>
    %68 = tpu.matmul %7, %67, %cst_45 {dimension_numbers = #tpu.dot_dimension_numbers<[1], [1], [0], [0], [0, 0, 1, 0], [], []>} : vector<1x64xf32>, vector<5x64xf32>, vector<1x5xf32> -> vector<1x5xf32>
    %69 = arith.addf %68, %6 : vector<1x5xf32>
    %70 = vector.extract_strided_slice %69 {offsets = [0, 0], sizes = [1, 4], strides = [1, 1]} : vector<1x5xf32> to vector<1x4xf32>
    %71 = vector.extract_strided_slice %69 {offsets = [0, 4], sizes = [1, 1], strides = [1, 1]} : vector<1x5xf32> to vector<1x1xf32>
    %cst_46 = arith.constant dense<0xFF800000> : vector<1xf32>
    %72 = vector.multi_reduction <maximumf>, %70, %cst_46 [1] : vector<1x4xf32> to vector<1xf32>
    %73 = vector.shape_cast %72 : vector<1xf32> to vector<1x1xf32>
    %74 = vector.broadcast %73 : vector<1x1xf32> to vector<1x4xf32>
    %75 = arith.subf %70, %74 : vector<1x4xf32>
    %76 = math.exp %75 : vector<1x4xf32>
    %cst_47 = arith.constant dense<0.000000e+00> : vector<1xf32>
    %77 = vector.multi_reduction <add>, %76, %cst_47 [1] : vector<1x4xf32> to vector<1xf32>
    %78 = vector.shape_cast %77 : vector<1xf32> to vector<1x1xf32>
    %79 = tpu.reciprocal %78 {approx = true} : vector<1x1xf32> -> vector<1x1xf32>
    %80 = vector.broadcast %79 : vector<1x1xf32> to vector<1x4xf32>
    %81 = arith.mulf %76, %80 : vector<1x4xf32>
    %c1_48 = arith.constant 1 : index
    %c0_49 = arith.constant 0 : index
    %82 = vector.load %arg10[%c1_48, %c0_49] : memref<2x4xf32, #tpu.memory_space<vmem>>, vector<1x4xf32>
    tpu.vector_store %arg10[%c1_48, %c0_49], %81 {strides = array<i32>} : memref<2x4xf32, #tpu.memory_space<vmem>>, vector<1x4xf32>,
    %c1_50 = arith.constant 1 : index
    %c0_51 = arith.constant 0 : index
    %83 = vector.load %arg11[%c1_50, %c0_51] : memref<2x1xf32, #tpu.memory_space<vmem>>, vector<1x1xf32>
    tpu.vector_store %arg11[%c1_50, %c0_51], %71 {strides = array<i32>} : memref<2x1xf32, #tpu.memory_space<vmem>>, vector<1x1xf32>,
    return
  }
  func.func @transform_0(%arg0: i32) -> (i32, i32, i32) {
    %c0_i32 = arith.constant 0 : i32
    %c0_i32_0 = arith.constant 0 : i32
    %c0_i32_1 = arith.constant 0 : i32
    return %arg0, %c0_i32, %c0_i32_0 : i32, i32, i32
  }
  func.func @transform_1(%arg0: i32) -> (i32, i32) {
    %c0_i32 = arith.constant 0 : i32
    %c0_i32_0 = arith.constant 0 : i32
    %c0_i32_1 = arith.constant 0 : i32
    return %c0_i32, %c0_i32_0 : i32, i32
  }
  func.func @transform_2(%arg0: i32) -> (i32, i32) {
    %c0_i32 = arith.constant 0 : i32
    %c0_i32_0 = arith.constant 0 : i32
    %c0_i32_1 = arith.constant 0 : i32
    return %c0_i32, %c0_i32_0 : i32, i32
  }
  func.func @transform_3(%arg0: i32) -> (i32, i32) {
    %c0_i32 = arith.constant 0 : i32
    %c0_i32_0 = arith.constant 0 : i32
    %c0_i32_1 = arith.constant 0 : i32
    return %c0_i32, %c0_i32_0 : i32, i32
  }
  func.func @transform_4(%arg0: i32) -> (i32, i32) {
    %c0_i32 = arith.constant 0 : i32
    %c0_i32_0 = arith.constant 0 : i32
    %c0_i32_1 = arith.constant 0 : i32
    return %c0_i32, %c0_i32_0 : i32, i32
  }
  func.func @transform_5(%arg0: i32) -> (i32, i32) {
    %c0_i32 = arith.constant 0 : i32
    %c0_i32_0 = arith.constant 0 : i32
    %c0_i32_1 = arith.constant 0 : i32
    return %c0_i32, %c0_i32_0 : i32, i32
  }
  func.func @transform_6(%arg0: i32) -> (i32, i32) {
    %c0_i32 = arith.constant 0 : i32
    %c0_i32_0 = arith.constant 0 : i32
    %c0_i32_1 = arith.constant 0 : i32
    return %c0_i32, %c0_i32_0 : i32, i32
  }
  func.func @transform_7(%arg0: i32) -> (i32, i32, i32) {
    %c0_i32 = arith.constant 0 : i32
    %c0_i32_0 = arith.constant 0 : i32
    %c0_i32_1 = arith.constant 0 : i32
    %c0_i32_2 = arith.constant 0 : i32
    return %c0_i32, %c0_i32_0, %c0_i32_1 : i32, i32, i32
  }
  func.func @transform_8(%arg0: i32) -> (i32, i32) {
    %c0_i32 = arith.constant 0 : i32
    %c0_i32_0 = arith.constant 0 : i32
    %c0_i32_1 = arith.constant 0 : i32
    return %c0_i32, %c0_i32_0 : i32, i32
  }
  func.func @transform_9(%arg0: i32) -> (i32, i32) {
    %c0_i32 = arith.constant 0 : i32
    %c0_i32_0 = arith.constant 0 : i32
    return %arg0, %c0_i32 : i32, i32
  }
  func.func @transform_10(%arg0: i32) -> (i32, i32) {
    %c0_i32 = arith.constant 0 : i32
    %c0_i32_0 = arith.constant 0 : i32
    return %arg0, %c0_i32 : i32, i32
  }
}

</mosaic_0001>

<bundles_post_ra>
// kernel: a2c_forward.1
= control target key start
LH: loop header
LB: loop body
LE: loop exit
PB: predicated region body
PF: predicated region fallthrough
CT: control target
= control target key end

     0   :  { %16 = vsyncpa [#allocation3], 0  ;;  %s3351_s0 = inlined_call_operand.vmem [shape: f32[2,4,256], index: 0, kind: input, shape index: {}]   ;;  %s3352_s1 = inlined_call_operand.vmem [shape: f32[16,4], index: 1, kind: input, shape index: {}]   ;;  %s3353_s2 = inlined_call_operand.vmem [shape: f32[16,1], index: 2, kind: input, shape index: {}]   ;;  %s3354_s3 = inlined_call_operand.vmem [shape: f32[32,16], index: 3, kind: input, shape index: {}]   ;;  %s3355_s4 = inlined_call_operand.vmem [shape: f32[32,1], index: 4, kind: input, shape index: {}]   ;;  %s3356_s5 = inlined_call_operand.vmem [shape: f32[64,32], index: 5, kind: input, shape index: {}]   ;;  %s3357_s6 = inlined_call_operand.vmem [shape: f32[64,1], index: 6, kind: input, shape index: {}]   ;;  %s3358_s7 = inlined_call_operand.hbm [shape: f32[5,64,256], index: 7, kind: input, shape index: {}]   ;;  %s3359_s8 = inlined_call_operand.vmem [shape: f32[1,5], index: 8, kind: input, shape index: {}]   ;;  %s3360_s9 = inlined_call_operand.hbm [shape: f32[2,4], index: 9, kind: output, shape index: {0}]   ;;  %s3361_s10 = inlined_call_operand.vmem [shape: f32[2,1], index: 10, kind: output, shape index: {1}]  }
   0x1   :  { %17 = vsyncpa [#allocation4], 0  ;;  %s2246_s13 = smov [#allocation2]   ;;  %s2198_s17 = scalar_lea.hbm %s3358_s7, 10240 }
   0x2   :  { %s37_s14 = sshll.u32 %s2246_s13, 4  ;;  %p2199_p0 = scmp.ne.s32.totalorder %s3358_s7, %s2198_s17  ;;  %s38_s14 = int_to_ptr.vmem [resolvable:$true] %s37_s14 }
   0x3   :  { %p2202_p1 = scmp.lt.u32.totalorder %s2198_s17, %s3358_s7 }
   0x5   :  { %p2204_p2 = pnand %p2202_p1, %p2199_p0 }
   0x7   :  { %2207 = shalt.err (!%p2204_p2)
}
   0x8   :  { %s2208_s22 = scalar_lea.vmem %s38_s14, 10240  ;;  %p2213_p4 = scmp.lt.s32.totalorder %s38_s14, %s38_s14 }
   0x9   :  { %p2209_p3 = scmp.ne.s32.totalorder %s38_s14, %s2208_s22  ;;  %p2214_p5 = scmp.lt.s32.totalorder %s2208_s22, %s2208_s22 }
   0xb   :  { %p2215_p6 = por %p2214_p5, %p2213_p4 }
   0xd   :  { %p2216_p7 = pnand %p2215_p6, %p2209_p3 }
   0xf   :  { %2219 = shalt.err (!%p2216_p7)
}
  0x10   :  { %s2247_s23 = smov 256   ;;  %s2248_s24 = smov 16  }
  0x11   :  { %43 = dma.hbm_to_vmem [thread:$0]  %s3358_s7, 10240, %s38_s14, [#allocation3], %s2247_s23, %s2247_s23, %s2248_s24  }
  0x12   :  { %2242 = dma.done.wait [#allocation3], 10240  }
  0x13   :  { %2243 = vsyncadd [#allocation3], 4294957056  ;;  %v3362_v0 = vmov 0.0   ;;  %v2250_v1 = vmov 0   ;;  %v78_v2 = vld [vmem:[%s3351_s0] sm:$0xff]  ;;  %vm98_vm0 = vcmask 1043456  }
  0x14   :  { %167 = vmatprep.mubr.f32.mxu0 %v3362_v0  ;;  %2172 = vset.pattern.permute.xlu0 %v2250_v1  ;;  %v90_v3 = vcombine.high %v78_v2, %v78_v2  ;;  %v51_v4 = vld [vmem:[%s3353_s2] sm:$0xff]  ;;  %vm91_vm1 = vcmask 31744   ;;  %v52_v6 = vld [vmem:[%s3353_s2 + $0x8] sm:$0xff]  ;;  %v59_v8 = vld [vmem:[%s3355_s4 + $0x10] sm:$0xff]  ;;  %vm204_vm2 = vcmask 130048   ;;  %vm354_vm3 = vcmask 261120  }
  0x15   :  { %281 = vmatprep.mubr.f32.mxu1 %v3362_v0  ;;  %2173 = vset.pattern.permute.xlu1 %v2250_v1  ;;  %v49_v5 = vld [vmem:[%s3352_s1] sm:$0xff]  ;;  %v50_v7 = vld [vmem:[%s3352_s1 + $0x8] sm:$0xff]  ;;  %v71_v10 = vld [vmem:[%s3357_s6 + $0x10] sm:$0xff]  ;;  %vm2251_vm4 = vmmov 0   ;;  %vm839_vm5 = vcmask 130112   ;;  %vm846_vm6 = vcmask 195712  }
  0x16   :  { %81 = vperm.xlu0 %2172, %v51_v4   ;;  %2084 = vmatprep.subr.msk.mxu0 %vm98_vm0, %v90_v3  ;;  %v69_v9 = vld [vmem:[%s3357_s6] sm:$0xff]  ;;  %v75_v12 = vld [vmem:[%s3357_s6 + $0x30] sm:$0xff]  ;;  %v58_v14 = vld [vmem:[%s3355_s4 + $0x8] sm:$0xff]  ;;  %vm853_vm7 = vcmask 261312   ;;  %vm3418_vm8 = vcmask 326912   ;;  %vm867_vm9 = vcmask 392512  }
  0x17   :  { %2085 = vmatpush1.msk.msra.mxu0 %vm98_vm0, %v78_v2  ;;  %v73_v11 = vld [vmem:[%s3357_s6 + $0x20] sm:$0xff]  ;;  %v60_v15 = vld [vmem:[%s3355_s4 + $0x18] sm:$0xff]  ;;  %v70_v16 = vld [vmem:[%s3357_s6 + $0x8] sm:$0xff]  ;;  %vm874_vm10 = vcmask 458112   ;;  %vm881_vm11 = vcmask 523712   ;;  %vm1039_vm12 = vcmask 1041409  }
  0x18   :  { %2086 = vmatmul.mubr.msk.f32.vlgmr.msra.gmra.mrb[0].mxu0 %vm91_vm1, %v49_v5  ;;  %v57_v13 = vld [vmem:[%s3355_s4] sm:$0xff]  ;;  %v72_v17 = vld [vmem:[%s3357_s6 + $0x18] sm:$0xff]  ;;  %v74_v18 = vld [vmem:[%s3357_s6 + $0x28] sm:$0xff]  ;;  %vm1041_vm13 = vcmask 1042434   ;;  %vm1043_vm14 = vcmask 1043459   ;;  %vm1045_vm15 = vcmask 1044484  }
  0x19   :  { %173 = vmatprep.mubr.f32.mxu0 %v3362_v0  ;;  %186 = vperm.xlu1 %2173, %v57_v13   ;;  %v76_v19 = vld [vmem:[%s3357_s6 + $0x38] sm:$0xff]  ;;  %v53_v36 = vld [vmem:[%s3354_s3] sm:$0xff]  ;;  %v54_v37 = vld [vmem:[%s3354_s3 + $0x8] sm:$0xff]  ;;  %s2254_s21 = smov [#allocation5]  }
  0x1a   :  { %86 = vperm.xlu0 %2172, %v52_v6   ;;  %v55_v38 = vld [vmem:[%s3354_s3 + $0x10] sm:$0xff]  ;;  %v56_v39 = vld [vmem:[%s3354_s3 + $0x18] sm:$0xff]  ;;  %s2071_s22 = sshll.u32 %s2254_s21, 4  ;;  %s2072_s22 = int_to_ptr.vmem [resolvable:$true] %s2071_s22 }
  0x1b   :  { %v63_v13 = vld [vmem:[%s3356_s5 + $0x10] sm:$0xff]  ;;  %s2220_s23 = scalar_lea.vmem %s2072_s22, 32  ;;  %p2225_p9 = scmp.lt.s32.totalorder %s2072_s22, %s2072_s22 }
  0x1c   :  { %2087 = vmatmul.mubr.msk.f32.gmra.mrb[2].mxu0 %vm91_vm1, %v50_v7  ;;  %p2221_p8 = scmp.ne.s32.totalorder %s2072_s22, %s2220_s23  ;;  %p2226_p10 = scmp.lt.s32.totalorder %s2220_s23, %s2220_s23 }
  0x1d   :  { %443 = vmatprep.mubr.f32.mxu0 %v3362_v0  ;;  %191 = vperm.xlu1 %2173, %v58_v14   ;;  %v64_v14 = vld [vmem:[%s3356_s5 + $0x18] sm:$0xff] }
  0x1e   :  { %196 = vperm.xlu0 %2172, %v59_v8   ;;  %p2227_p11 = por %p2226_p10, %p2225_p9 }
  0x20   :  { %p2228_p12 = pnand %p2227_p11, %p2221_p8 }
  0x21   :  { %201 = vperm.xlu1 %2173, %v60_v15   ;;  %v65_v15 = vld [vmem:[%s3356_s5 + $0x20] sm:$0xff] }
  0x22   :  { %316 = vperm.xlu0 %2172, %v69_v9   ;;  %v61_v9 = vld [vmem:[%s3356_s5] sm:$0xff] }
  0x25   :  { %321 = vperm.xlu1 %2173, %v70_v16   ;;  %v66_v16 = vld [vmem:[%s3356_s5 + $0x28] sm:$0xff] }
  0x26   :  { %326 = vperm.xlu0 %2172, %v71_v10   ;;  %v67_v10 = vld [vmem:[%s3356_s5 + $0x30] sm:$0xff] }
  0x29   :  { %331 = vperm.xlu1 %2173, %v72_v17  }
  0x2a   :  { %336 = vperm.xlu0 %2172, %v73_v11   ;;  %v62_v11 = vld [vmem:[%s3356_s5 + $0x8] sm:$0xff] }
  0x2d   :  { %341 = vperm.xlu1 %2173, %v74_v18  }
  0x2e   :  { %346 = vperm.xlu0 %2172, %v75_v12   ;;  %v68_v12 = vld [vmem:[%s3356_s5 + $0x38] sm:$0xff] }
  0x31   :  { %351 = vperm.xlu1 %2173, %v76_v19  }
  0x95   :  { %v2381_v20 = vpop.permute.xlu0 %81 }
  0x98   :  { %v2409_v40 = vpop.permute.xlu1 %186 }
  0x99   :  { %v2384_v24 = vpop.permute.xlu0 %86 }
  0x9c   :  { %v2412_v44 = vpop.permute.xlu1 %191 }
  0x9d   :  { %v2417_v57 = vpop.permute.xlu0 %196 }
  0xa0   :  { %v2420_v60 = vpop.permute.xlu1 %201 }
  0xa1   :  { %v2465_v17 = vpop.permute.xlu0 %316 }
  0xa4   :  { %v2467_v18 = vpop.permute.xlu1 %321 }
  0xa5   :  { %v2469_v19 = vpop.permute.xlu0 %326 }
  0xeb   :  { %v169_v21 = vpop.f32.mrb[0].mxu0 }
  0xec   :  { %v171_v22 = vpop.f32.mrb[1].mxu0  ;;  %v170_v23 = vadd.f32 %v169_v21, %v2381_v20  ;;  %v2471_v21 = vpop.permute.xlu1 %331 }
  0xed   :  { %v172_v25 = vadd.f32 %v171_v22, %v2381_v20  ;;  %3419 = vst [vmem:[#allocation8_spill] sm:$0xff] %v2471_v21  ;;  %v2473_v22 = vpop.permute.xlu0 %336 }
  0xee   :  { %v180_v30 = vmax.f32 %v170_v23, 0.0  ;;  %3420 = vst [vmem:[#allocation9_spill] sm:$0xff] %v2473_v22 }
  0xef   :  { %v175_v26 = vpop.f32.mrb[2].mxu0  ;;  %v181_v32 = vmax.f32 %v172_v25, 0.0 }
  0xf0   :  { %v176_v27 = vadd.f32 %v175_v26, %v2384_v24  ;;  %v177_v28 = vpop.f32.mrb[3].mxu0  ;;  %v2475_v23 = vpop.permute.xlu1 %341 }
  0xf1   :  { %v178_v29 = vadd.f32 %v177_v28, %v2384_v24  ;;  %3421 = vst [vmem:[#allocation10_spill] sm:$0xff] %v2475_v23  ;;  %v2477_v25 = vpop.permute.xlu0 %346 }
  0xf2   :  { %v182_v31 = vmax.f32 %v176_v27, 0.0  ;;  %3422 = vst [vmem:[#allocation11_spill] sm:$0xff] %v2477_v25 }
  0xf3   :  { %v183_v33 = vmax.f32 %v178_v29, 0.0 }
  0xf4   :  { %v2137_v34 = vpack.c.bf16 %v182_v31, %v180_v30 }
  0xf5   :  { %v2135_v35 = vpack.c.bf16 %v183_v33, %v181_v32 }
  0xf7   :  { %2136 = vmatprep.subr.bf16.mxu1 %v2135_v35  ;;  %v508_v35 = vld [vmem:[#allocation2] sm:$0xff] }
  0xf8   :  { %2138 = vmatpush1.bf16.msra.mxu1 %v2137_v34  ;;  %v540_v34 = vld [vmem:[#allocation2 + $0x100] sm:$0xff] }
  0xfb   :  { %2088 = vmatmul.mubr.msk.f32.vlgmr.msra.gmra.mrb[0].mxu1 %vm204_vm2, %v53_v36  ;;  %v2483_v36 = vpop.permute.xlu1 %351 }
  0xfc   :  { %287 = vmatprep.mubr.f32.mxu1 %v3362_v0  ;;  %3423 = vst [vmem:[#allocation12_spill] sm:$0xff] %v2483_v36 }
  0xff   :  { %2089 = vmatmul.mubr.msk.f32.gmra.mrb[2].mxu1 %vm204_vm2, %v54_v37 }
 0x100   :  { %293 = vmatprep.mubr.f32.mxu1 %v3362_v0 }
 0x103   :  { %2090 = vmatmul.mubr.msk.f32.gmra.mrb[4].mxu1 %vm204_vm2, %v55_v38 }
 0x104   :  { %299 = vmatprep.mubr.f32.mxu1 %v3362_v0 }
 0x107   :  { %2091 = vmatmul.mubr.msk.f32.gmra.mrb[6].mxu1 %vm204_vm2, %v56_v39  ;;  %v541_v39 = vld [vmem:[#allocation2 + $0x108] sm:$0xff] }
 0x108   :  { %479 = vmatprep.mubr.f32.mxu1 %v3362_v0 }
 0x1ce   :  { %v283_v41 = vpop.f32.mrb[0].mxu1 }
 0x1cf   :  { %v285_v42 = vpop.f32.mrb[1].mxu1  ;;  %v284_v43 = vadd.f32 %v283_v41, %v2409_v40  ;;  %v509_v41 = vld [vmem:[#allocation2 + $0x8] sm:$0xff] }
 0x1d0   :  { %v286_v45 = vadd.f32 %v285_v42, %v2409_v40 }
 0x1d1   :  { %v306_v50 = vmax.f32 %v284_v43, 0.0 }
 0x1d2   :  { %v289_v46 = vpop.f32.mrb[2].mxu1  ;;  %v307_v52 = vmax.f32 %v286_v45, 0.0 }
 0x1d3   :  { %v290_v47 = vadd.f32 %v289_v46, %v2412_v44  ;;  %v291_v48 = vpop.f32.mrb[3].mxu1 }
 0x1d4   :  { %v292_v49 = vadd.f32 %v291_v48, %v2412_v44  ;;  %v521_v48 = vld [vmem:[#allocation2 + $0x68] sm:$0xff] }
 0x1d5   :  { %v308_v51 = vmax.f32 %v290_v47, 0.0  ;;  %v520_v47 = vld [vmem:[#allocation2 + $0x60] sm:$0xff] }
 0x1d6   :  { %v309_v53 = vmax.f32 %v292_v49, 0.0  ;;  %v295_v54 = vpop.f32.mrb[4].mxu1 }
 0x1d7   :  { %v2141_v55 = vpack.c.bf16 %v308_v51, %v306_v50  ;;  %v297_v56 = vpop.f32.mrb[5].mxu1  ;;  %v296_v59 = vadd.f32 %v295_v54, %v2417_v57 }
 0x1d8   :  { %v2139_v58 = vpack.c.bf16 %v309_v53, %v307_v52  ;;  %v298_v61 = vadd.f32 %v297_v56, %v2417_v57 }
 0x1d9   :  { %v310_v3 = vmax.f32 %v296_v59, 0.0  ;;  %v524_v59 = vld [vmem:[#allocation2 + $0x80] sm:$0xff] }
 0x1da   :  { %v301_v62 = vpop.f32.mrb[6].mxu1  ;;  %2140 = vmatprep.subr.bf16.mxu0 %v2139_v58  ;;  %2159 = vmatprep.subr.bf16.mxu1 %v2139_v58  ;;  %v311_v5 = vmax.f32 %v298_v61, 0.0  ;;  %v525_v61 = vld [vmem:[#allocation2 + $0x88] sm:$0xff] }
 0x1db   :  { %v302_v63 = vadd.f32 %v301_v62, %v2420_v60  ;;  %v303_v1 = vpop.f32.mrb[7].mxu1  ;;  %2142 = vmatpush1.bf16.msra.mxu0 %v2141_v55  ;;  %2161 = vmatpush1.bf16.msra.mxu1 %v2141_v55 }
 0x1dc   :  { %v304_v2 = vadd.f32 %v303_v1, %v2420_v60 }
 0x1dd   :  { %v312_v4 = vmax.f32 %v302_v63, 0.0 }
 0x1de   :  { %v313_v6 = vmax.f32 %v304_v2, 0.0  ;;  %v510_v2 = vld [vmem:[#allocation2 + $0x10] sm:$0xff] }
 0x1df   :  { %v2145_v7 = vpack.c.bf16 %v312_v4, %v310_v3  ;;  %v511_v3 = vld [vmem:[#allocation2 + $0x18] sm:$0xff] }
 0x1e0   :  { %v2143_v8 = vpack.c.bf16 %v313_v6, %v311_v5 }
 0x1e2   :  { %2144 = vmatprep.subr.bf16.mxu0 %v2143_v8  ;;  %2160 = vmatprep.subr.bf16.mxu1 %v2143_v8 }
 0x1e3   :  { %2146 = vmatpush1.bf16.msra.mxu0 %v2145_v7  ;;  %2162 = vmatpush1.bf16.msra.mxu1 %v2145_v7 }
 0x1e4   :  { %2125 = vmatprep.subr.mxu1 %v3362_v0 }
 0x1e6   :  { %2092 = vmatmul.mubr.msk.f32.vlgmr.msra.gmra.mrb[4].mxu0 %vm354_vm3, %v61_v9  ;;  %2098 = vmatmul.mubr.msk.f32.vlgmr.msra.gmra.mrb[8].mxu1 %vm354_vm3, %v67_v10  ;;  %v2499_v9 = vld [vmem:[#allocation2 + $0x180] sm:$0xff]  ;;  %v2501_v10 = vld [vmem:[#allocation2 + $0x188] sm:$0xff] }
 0x1e7   :  { %449 = vmatprep.mubr.f32.mxu0 %v3362_v0  ;;  %485 = vmatprep.mubr.f32.mxu1 %v3362_v0 }
 0x1ea   :  { %2093 = vmatmul.mubr.msk.f32.gmra.mrb[6].mxu0 %vm354_vm3, %v62_v11  ;;  %2099 = vmatmul.mubr.msk.f32.gmra.mrb[10].mxu1 %vm354_vm3, %v68_v12 }
 0x1eb   :  { %455 = vmatprep.mubr.f32.mxu0 %v3362_v0 }
 0x1ee   :  { %2094 = vmatmul.mubr.msk.f32.gmra.mrb[8].mxu0 %vm354_vm3, %v63_v13 }
 0x1ef   :  { %461 = vmatprep.mubr.f32.mxu0 %v3362_v0 }
 0x1f2   :  { %2095 = vmatmul.mubr.msk.f32.gmra.mrb[10].mxu0 %vm354_vm3, %v64_v14 }
 0x1f3   :  { %467 = vmatprep.mubr.f32.mxu0 %v3362_v0 }
 0x1f6   :  { %2096 = vmatmul.mubr.msk.f32.gmra.mrb[12].mxu0 %vm354_vm3, %v65_v15  ;;  %v558_v15 = vld [vmem:[#allocation2 + $0x190] sm:$0xff] }
 0x1f7   :  { %473 = vmatprep.mubr.f32.mxu0 %v3362_v0 }
 0x1fa   :  { %2097 = vmatmul.mubr.msk.f32.gmra.mrb[14].mxu0 %vm354_vm3, %v66_v16  ;;  %v559_v16 = vld [vmem:[#allocation2 + $0x198] sm:$0xff] }
 0x1fb   :  { %1392 = vmatprep.mubr.f32.mxu0 %v3362_v0 }
 0x2b9   :  { %v445_v26 = vpop.f32.mrb[4].mxu0  ;;  %v481_v27 = vpop.f32.mrb[8].mxu1 }
 0x2ba   :  { %v446_v28 = vadd.f32 %v445_v26, %v2465_v17  ;;  %v482_v29 = vadd.f32 %v481_v27, %v2477_v25  ;;  %v447_v30 = vpop.f32.mrb[5].mxu0  ;;  %v483_v31 = vpop.f32.mrb[9].mxu1 }
 0x2bb   :  { %v448_v32 = vadd.f32 %v447_v30, %v2465_v17  ;;  %v484_v33 = vadd.f32 %v483_v31, %v2477_v25  ;;  %v2509_v30 = vld [vmem:[#allocation2 + $0x208] sm:$0xff] }
 0x2bc   :  { %v492_v37 = vmax.f32 %v446_v28, 0.0  ;;  %v2485_v38 = vmax.f32 %v482_v29, 0.0  ;;  %v2507_v29 = vld [vmem:[#allocation2 + $0x200] sm:$0xff] }
 0x2bd   :  { %v493_v42 = vmax.f32 %v448_v32, 0.0  ;;  %v2487_v43 = vmax.f32 %v484_v33, 0.0  ;;  %v451_v45 = vpop.f32.mrb[6].mxu0  ;;  %v487_v46 = vpop.f32.mrb[10].mxu1 }
 0x2be   :  { %v452_v49 = vadd.f32 %v451_v45, %v2467_v18  ;;  %v453_v50 = vpop.f32.mrb[7].mxu0  ;;  %v489_v51 = vpop.f32.mrb[11].mxu1  ;;  %v620_v52 = vmul.f32 %v540_v34, %v492_v37  ;;  %v588_v53 = vmul.f32 %v508_v35, %v492_v37  ;;  %v488_v54 = vadd.f32 %v487_v46, %v2483_v36  ;;  %v574_v35 = vld [vmem:[#allocation2 + $0x210] sm:$0xff] }
 0x2bf   :  { %v454_v55 = vadd.f32 %v453_v50, %v2467_v18  ;;  %v621_v56 = vmul.f32 %v541_v39, %v493_v42  ;;  %v589_v58 = vmul.f32 %v509_v41, %v493_v42  ;;  %v600_v63 = vmul.f32 %v520_v47, %v2485_v38 }
 0x2c0   :  { %v2492_v62 = vmax.f32 %v452_v49, 0.0  ;;  %v601_v1 = vmul.f32 %v521_v48, %v2487_v43  ;;  %v490_v5 = vadd.f32 %v489_v51, %v2483_v36  ;;  %v604_v13 = vmul.f32 %v524_v59, %v492_v37  ;;  %v575_v48 = vld [vmem:[#allocation2 + $0x218] sm:$0xff]  ;;  %v536_v49 = vld [vmem:[#allocation2 + $0xe0] sm:$0xff] }
 0x2c1   :  { %v2496_v4 = vmax.f32 %v454_v55, 0.0  ;;  %v457_v6 = vpop.f32.mrb[8].mxu0  ;;  %v716_v7 = vadd.f32 %v621_v56, %v620_v52  ;;  %v668_v8 = vadd.f32 %v589_v58, %v588_v53  ;;  %v605_v14 = vmul.f32 %v525_v61, %v493_v42  ;;  %v537_v55 = vld [vmem:[#allocation2 + $0xe8] sm:$0xff]  ;;  %v538_v56 = vld [vmem:[#allocation2 + $0xf0] sm:$0xff]  ;;  %v539_v58 = vld [vmem:[#allocation2 + $0xf8] sm:$0xff] }
 0x2c2   :  { %v459_v11 = vpop.f32.mrb[9].mxu0  ;;  %v686_v12 = vadd.f32 %v601_v1, %v600_v63  ;;  %v2503_v26 = vmax.f32 %v488_v54, 0.0  ;;  %v590_v27 = vmul.f32 %v510_v2, %v2492_v62  ;;  %v458_v31 = vadd.f32 %v457_v6, %v2469_v19  ;;  %v552_v1 = vld [vmem:[#allocation2 + $0x160] sm:$0xff]  ;;  %v553_v2 = vld [vmem:[#allocation2 + $0x168] sm:$0xff]  ;;  %v2618_v36 = vld [vmem:[#allocation2 + $0x1b8] sm:$0xff] }
 0x2c3   :  { %717 = vadd.xlane.f32.xlu1 %v716_v7  ;;  %669 = vadd.xlane.f32.xlu0 %v668_v8  ;;  %v591_v28 = vmul.f32 %v511_v3, %v2496_v4  ;;  %v692_v32 = vadd.f32 %v605_v14, %v604_v13  ;;  %v636_v33 = vmul.f32 %v2499_v9, %v492_v37  ;;  %v2514_v39 = vmax.f32 %v490_v5, 0.0  ;;  %v554_v13 = vld [vmem:[#allocation2 + $0x170] sm:$0xff]  ;;  %v555_v14 = vld [vmem:[#allocation2 + $0x178] sm:$0xff] }
 0x2c4   :  { %v637_v34 = vmul.f32 %v2501_v10, %v493_v42  ;;  %v638_v46 = vmul.f32 %v558_v15, %v2492_v62  ;;  %v639_v47 = vmul.f32 %v559_v16, %v2496_v4  ;;  %v460_v50 = vadd.f32 %v459_v11, %v2469_v19  ;;  %3439 = vst [vmem:[#allocation28_spill] sm:$0xff] %v2618_v36 }
 0x2c5   :  { %v463_v41 = vpop.f32.mrb[10].mxu0  ;;  %v671_v45 = vadd.f32 %v591_v28, %v590_v27  ;;  %v652_v53 = vmul.f32 %v2507_v29, %v492_v37  ;;  %v653_v54 = vmul.f32 %v2509_v30, %v493_v42  ;;  %v654_v63 = vmul.f32 %v574_v35, %v2492_v62 }
 0x2c6   :  { %v465_v51 = vpop.f32.mrb[11].mxu0  ;;  %v740_v52 = vadd.f32 %v637_v34, %v636_v33  ;;  %v464_v59 = vadd.f32 %v463_v41, %v2471_v21  ;;  %v743_v61 = vadd.f32 %v639_v47, %v638_v46  ;;  %v2523_v3 = vmax.f32 %v458_v31, 0.0  ;;  %v569_v33 = vld [vmem:[#allocation2 + $0x1e8] sm:$0xff]  ;;  %v2535_v34 = vld [vmem:[#allocation2 + $0x20] sm:$0xff] }
 0x2c7   :  { %687 = vadd.xlane.f32.xlu1 %v686_v12  ;;  %693 = vadd.xlane.f32.xlu0 %v692_v32  ;;  %v764_v5 = vadd.f32 %v653_v54, %v652_v53  ;;  %v655_v6 = vmul.f32 %v575_v48, %v2496_v4  ;;  %v616_v37 = vmul.f32 %v536_v49, %v2485_v38  ;;  %v2531_v15 = vmax.f32 %v460_v50, 0.0  ;;  %v568_v32 = vld [vmem:[#allocation2 + $0x1e0] sm:$0xff]  ;;  %v2542_v48 = vld [vmem:[#allocation2 + $0x28] sm:$0xff]  ;;  %v2544_v49 = vld [vmem:[#allocation2 + $0x90] sm:$0xff] }
 0x2c8   :  { %v466_v42 = vadd.f32 %v465_v51, %v2471_v21  ;;  %v617_v8 = vmul.f32 %v537_v55, %v2487_v43  ;;  %v618_v11 = vmul.f32 %v538_v56, %v2503_v26  ;;  %v619_v12 = vmul.f32 %v539_v58, %v2514_v39  ;;  %3424 = vst [vmem:[#allocation13_spill] sm:$0xff] %v2535_v34  ;;  %v2551_v55 = vld [vmem:[#allocation2 + $0x98] sm:$0xff] }
 0x2c9   :  { %v469_v7 = vpop.f32.mrb[12].mxu0  ;;  %v767_v27 = vadd.f32 %v655_v6, %v654_v63  ;;  %v632_v28 = vmul.f32 %v552_v1, %v2485_v38  ;;  %v633_v31 = vmul.f32 %v553_v2, %v2487_v43  ;;  %v2537_v35 = vmax.f32 %v464_v59, 0.0  ;;  %3425 = vst [vmem:[#allocation14_spill] sm:$0xff] %v2542_v48  ;;  %3426 = vst [vmem:[#allocation15_spill] sm:$0xff] %v2544_v49  ;;  %v2559_v63 = vld [vmem:[#allocation2 + $0x120] sm:$0xff]  ;;  %v2561_v1 = vld [vmem:[#allocation2 + $0x128] sm:$0xff] }
 0x2ca   :  { %v471_v16 = vpop.f32.mrb[13].mxu0  ;;  %v470_v41 = vadd.f32 %v469_v7, %v2473_v22  ;;  %v710_v46 = vadd.f32 %v617_v8, %v616_v37  ;;  %v2540_v47 = vadd.f32 %v619_v12, %v618_v11  ;;  %v634_v53 = vmul.f32 %v554_v13, %v2503_v26  ;;  %3427 = vst [vmem:[#allocation16_spill] sm:$0xff] %v2551_v55  ;;  %v2570_v8 = vld [vmem:[#allocation2 + $0x110] sm:$0xff]  ;;  %v2572_v11 = vld [vmem:[#allocation2 + $0x118] sm:$0xff] }
 0x2cb   :  { %672 = vadd.xlane.f32.xlu1 %v671_v45  ;;  %741 = vadd.xlane.f32.xlu0 %v740_v52  ;;  %v472_v50 = vadd.f32 %v471_v16, %v2473_v22  ;;  %v2547_v51 = vadd.f32 %v633_v31, %v632_v28  ;;  %v635_v54 = vmul.f32 %v555_v14, %v2514_v39  ;;  %v2553_v56 = vmax.f32 %v466_v42, 0.0  ;;  %v2581_v28 = vld [vmem:[#allocation2 + $0x1a0] sm:$0xff]  ;;  %v2583_v31 = vld [vmem:[#allocation2 + $0x1a8] sm:$0xff] }
 0x2cc   :  { %v648_v52 = vmul.f32 %v568_v32, %v2485_v38  ;;  %v649_v58 = vmul.f32 %v569_v33, %v2487_v43  ;;  %v592_v59 = vmul.f32 %v2535_v34, %v2523_v3  ;;  %3428 = vst [vmem:[#allocation17_spill] sm:$0xff] %v2559_v63  ;;  %3429 = vst [vmem:[#allocation18_spill] sm:$0xff] %v2561_v1  ;;  %v2574_v12 = vmax.f32 %v470_v41, 0.0  ;;  %v522_v32 = vld [vmem:[#allocation2 + $0x70] sm:$0xff] }
 0x2cd   :  { %v475_v45 = vpop.f32.mrb[14].mxu0  ;;  %v2564_v37 = vadd.f32 %v635_v54, %v634_v53  ;;  %v593_v42 = vmul.f32 %v2542_v48, %v2531_v15  ;;  %v606_v7 = vmul.f32 %v2544_v49, %v2492_v62  ;;  %3430 = vst [vmem:[#allocation19_spill] sm:$0xff] %v2570_v8  ;;  %3431 = vst [vmem:[#allocation20_spill] sm:$0xff] %v2572_v11  ;;  %v2585_v33 = vmax.f32 %v472_v50, 0.0  ;;  %v2593_v54 = vld [vmem:[#allocation2 + $0x30] sm:$0xff] }
 0x2ce   :  { %v476_v2 = vadd.f32 %v475_v45, %v2475_v23  ;;  %v477_v6 = vpop.f32.mrb[15].mxu0  ;;  %v2577_v14 = vadd.f32 %v649_v58, %v648_v52  ;;  %v607_v16 = vmul.f32 %v2551_v55, %v2496_v4  ;;  %3432 = vst [vmem:[#allocation21_spill] sm:$0xff] %v2581_v28  ;;  %3433 = vst [vmem:[#allocation22_spill] sm:$0xff] %v2583_v31 }
 0x2cf   :  { %v478_v13 = vadd.f32 %v477_v6, %v2475_v23  ;;  %744 = vadd.xlane.f32.xlu1 %v743_v61  ;;  %765 = vadd.xlane.f32.xlu0 %v764_v5  ;;  %v2587_v53 = vadd.f32 %v593_v42, %v592_v59  ;;  %v624_v41 = vmul.f32 %v2559_v63, %v2523_v3  ;;  %v523_v5 = vld [vmem:[#allocation2 + $0x78] sm:$0xff]  ;;  %v2605_v6 = vld [vmem:[#allocation2 + $0xa0] sm:$0xff]  ;;  %v2607_v42 = vld [vmem:[#allocation2 + $0xa8] sm:$0xff] }
 0x2d0   :  { %v625_v61 = vmul.f32 %v2561_v1, %v2531_v15  ;;  %3434 = vst [vmem:[#allocation23_spill] sm:$0xff] %v2593_v54  ;;  %v2595_v45 = vmax.f32 %v476_v2, 0.0  ;;  %v2597_v52 = vadd.f32 %v607_v16, %v606_v7  ;;  %v622_v58 = vmul.f32 %v2570_v8, %v2492_v62  ;;  %v2603_v59 = vld [vmem:[#allocation2 + $0x38] sm:$0xff]  ;;  %3436 = vst [vmem:[#allocation25_spill] sm:$0xff] %v2605_v6  ;;  %v2616_v62 = vld [vmem:[#allocation2 + $0x1b0] sm:$0xff] }
 0x2d1   :  { %v623_v50 = vmul.f32 %v2572_v11, %v2496_v4  ;;  %3435 = vst [vmem:[#allocation24_spill] sm:$0xff] %v2603_v59  ;;  %3437 = vst [vmem:[#allocation26_spill] sm:$0xff] %v2607_v42  ;;  %v640_v2 = vmul.f32 %v2581_v28, %v2523_v3  ;;  %v641_v7 = vmul.f32 %v2583_v31, %v2531_v15  ;;  %v2620_v4 = vld [vmem:[#allocation2 + $0x220] sm:$0xff]  ;;  %v2622_v25 = vmax.f32 %v478_v13, 0.0  ;;  %v2629_v31 = vld [vmem:[#allocation2 + $0x228] sm:$0xff] }
 0x2d2   :  { %v2609_v0 = vadd.f32 %v625_v61, %v624_v41  ;;  %v602_v16 = vmul.f32 %v522_v32, %v2503_v26  ;;  %3438 = vst [vmem:[#allocation27_spill] sm:$0xff] %v2616_v62  ;;  %3440 = vst [vmem:[#allocation29_spill] sm:$0xff] %v2620_v4  ;;  %v603_v61 = vmul.f32 %v523_v5, %v2514_v39  ;;  %v2631_v32 = vld [vmem:[#allocation2 + $0x230] sm:$0xff]  ;;  %v2641_v13 = vld [vmem:[#allocation2 + $0x238] sm:$0xff] }
 0x2d3   :  { %768 = vadd.xlane.f32.xlu1 %v767_v27  ;;  %711 = vadd.xlane.f32.xlu0 %v710_v46  ;;  %v2624_v41 = vadd.f32 %v623_v50, %v622_v58  ;;  %v594_v23 = vmul.f32 %v2593_v54, %v2537_v35  ;;  %3441 = vst [vmem:[#allocation30_spill] sm:$0xff] %v2629_v31  ;;  %3442 = vst [vmem:[#allocation31_spill] sm:$0xff] %v2631_v32  ;;  %v2643_v5 = vld [vmem:[#allocation2 + $0xb0] sm:$0xff]  ;;  %v2655_v54 = vld [vmem:[#allocation2 + $0xc0] sm:$0xff] }
 0x2d4   :  { %v2633_v28 = vadd.f32 %v641_v7, %v640_v2  ;;  %v595_v1 = vmul.f32 %v2603_v59, %v2553_v56  ;;  %v608_v27 = vmul.f32 %v2605_v6, %v2523_v3  ;;  %v609_v46 = vmul.f32 %v2607_v42, %v2531_v15  ;;  %3443 = vst [vmem:[#allocation32_spill] sm:$0xff] %v2641_v13  ;;  %v2653_v59 = vld [vmem:[#allocation2 + $0xb8] sm:$0xff]  ;;  %v2657_v63 = vld [vmem:[#allocation2 + $0xc8] sm:$0xff] }
 0x2d5   :  { %3444 = vst [vmem:[#allocation33_spill] sm:$0xff] %v2643_v5  ;;  %v2645_v58 = vadd.f32 %v603_v61, %v602_v16  ;;  %v642_v50 = vmul.f32 %v2616_v62, %v2537_v35  ;;  %v643_v2 = vmul.f32 %v2618_v36, %v2553_v56  ;;  %v656_v7 = vmul.f32 %v2620_v4, %v2523_v3  ;;  %v2667_v36 = vld [vmem:[#allocation2 + $0x130] sm:$0xff]  ;;  %v2669_v62 = vld [vmem:[#allocation2 + $0x138] sm:$0xff] }
 0x2d6   :  { %3445 = vst [vmem:[#allocation34_spill] sm:$0xff] %v2653_v59  ;;  %3446 = vst [vmem:[#allocation35_spill] sm:$0xff] %v2655_v54  ;;  %v2659_v22 = vadd.f32 %v595_v1, %v594_v23  ;;  %v2661_v48 = vadd.f32 %v609_v46, %v608_v27  ;;  %v657_v16 = vmul.f32 %v2629_v31, %v2531_v15  ;;  %v2671_v3 = vld [vmem:[#allocation2 + $0xd0] sm:$0xff]  ;;  %v2681_v27 = vld [vmem:[#allocation2 + $0xd8] sm:$0xff] }
 0x2d7   :  { %3447 = vst [vmem:[#allocation36_spill] sm:$0xff] %v2657_v63  ;;  %v658_v61 = vmul.f32 %v2631_v32, %v2537_v35  ;;  %3448 = vst [vmem:[#allocation37_spill] sm:$0xff] %v2667_v36  ;;  %714 = vadd.xlane.f32.xlu1 %v2540_v47  ;;  %735 = vadd.xlane.f32.xlu0 %v2547_v51  ;;  %v2675_v23 = vadd.f32 %v643_v2, %v642_v50  ;;  %v2683_v46 = vld [vmem:[#allocation2 + $0x40] sm:$0xff]  ;;  %v2693_v50 = vld [vmem:[#allocation2 + $0x48] sm:$0xff] }
 0x2d8   :  { %3449 = vst [vmem:[#allocation38_spill] sm:$0xff] %v2669_v62  ;;  %3450 = vst [vmem:[#allocation39_spill] sm:$0xff] %v2671_v3  ;;  %v659_v1 = vmul.f32 %v2641_v13, %v2553_v56  ;;  %v610_v15 = vmul.f32 %v2643_v5, %v2537_v35  ;;  %v2685_v32 = vadd.f32 %v657_v16, %v656_v7  ;;  %v2695_v2 = vld [vmem:[#allocation2 + $0x150] sm:$0xff] }
 0x2d9   :  { %3451 = vst [vmem:[#allocation40_spill] sm:$0xff] %v2681_v27  ;;  %3452 = vst [vmem:[#allocation41_spill] sm:$0xff] %v2683_v46  ;;  %v611_v31 = vmul.f32 %v2653_v59, %v2553_v56  ;;  %v612_v47 = vmul.f32 %v2655_v54, %v2574_v12  ;;  %v613_v51 = vmul.f32 %v2657_v63, %v2585_v33  ;;  %v2705_v59 = vld [vmem:[#allocation2 + $0x158] sm:$0xff]  ;;  %v2707_v54 = vld [vmem:[#allocation2 + $0x140] sm:$0xff] }
 0x2da   :  { %3453 = vst [vmem:[#allocation42_spill] sm:$0xff] %v2693_v50  ;;  %3454 = vst [vmem:[#allocation43_spill] sm:$0xff] %v2695_v2  ;;  %v2697_v13 = vadd.f32 %v659_v1, %v658_v61  ;;  %v626_v5 = vmul.f32 %v2667_v36, %v2537_v35  ;;  %v627_v7 = vmul.f32 %v2669_v62, %v2553_v56  ;;  %v2709_v63 = vld [vmem:[#allocation2 + $0x148] sm:$0xff]  ;;  %v2719_v56 = vld [vmem:[#allocation2 + $0x1d0] sm:$0xff] }
 0x2db   :  { %v614_v16 = vmul.f32 %v2671_v3, %v2595_v45  ;;  %3455 = vst [vmem:[#allocation44_spill] sm:$0xff] %v2705_v59  ;;  %3456 = vst [vmem:[#allocation45_spill] sm:$0xff] %v2707_v54  ;;  %v2711_v4 = vadd.f32 %v611_v31, %v610_v15  ;;  %v2713_v34 = vadd.f32 %v613_v51, %v612_v47  ;;  %v2721_v1 = vld [vmem:[#allocation2 + $0x1d8] sm:$0xff]  ;;  %v2723_v3 = vld [vmem:[#allocation2 + $0x1c0] sm:$0xff]  ;;  %738 = vadd.xlane.f32.xlu1 %v2564_v37 }
 0x2dc   :  { %3457 = vst [vmem:[#allocation46_spill] sm:$0xff] %v2709_v63  ;;  %v615_v61 = vmul.f32 %v2681_v27, %v2622_v25  ;;  %v596_v35 = vmul.f32 %v2683_v46, %v2574_v12  ;;  %3458 = vst [vmem:[#allocation47_spill] sm:$0xff] %v2719_v56  ;;  %759 = vadd.xlane.f32.xlu0 %v2577_v14  ;;  %v725_v31 = vadd.f32 %v627_v7, %v626_v5  ;;  %v2731_v51 = vld [vmem:[#allocation2 + $0x1c8] sm:$0xff]  ;;  %v2733_v27 = vld [vmem:[#allocation2 + $0x250] sm:$0xff] }
 0x2dd   :  { %3459 = vst [vmem:[#allocation48_spill] sm:$0xff] %v2721_v1  ;;  %3460 = vst [vmem:[#allocation49_spill] sm:$0xff] %v2723_v3  ;;  %v597_v15 = vmul.f32 %v2693_v50, %v2585_v33  ;;  %v630_v47 = vmul.f32 %v2695_v2, %v2595_v45  ;;  %v631_v62 = vmul.f32 %v2705_v59, %v2622_v25  ;;  %v2741_v5 = vld [vmem:[#allocation2 + $0x258] sm:$0xff]  ;;  %v2743_v7 = vld [vmem:[#allocation2 + $0x240] sm:$0xff] }
 0x2de   :  { %3461 = vst [vmem:[#allocation50_spill] sm:$0xff] %v2731_v51  ;;  %3462 = vst [vmem:[#allocation51_spill] sm:$0xff] %v2733_v27  ;;  %v707_v46 = vadd.f32 %v615_v61, %v614_v16  ;;  %v628_v37 = vmul.f32 %v2707_v54, %v2574_v12  ;;  %v629_v14 = vmul.f32 %v2709_v63, %v2585_v33  ;;  %v2751_v59 = vld [vmem:[#allocation2 + $0x248] sm:$0xff]  ;;  %v584_v54 = vld [vmem:[#allocation2 + $0x260] sm:$0xff] }
 0x2df   :  { %3463 = vst [vmem:[#allocation52_spill] sm:$0xff] %v2741_v5  ;;  %3464 = vst [vmem:[#allocation53_spill] sm:$0xff] %v2743_v7  ;;  %v680_v50 = vadd.f32 %v597_v15, %v596_v35  ;;  %v646_v2 = vmul.f32 %v2719_v56, %v2595_v45  ;;  %v647_v16 = vmul.f32 %v2721_v1, %v2622_v25  ;;  %v585_v36 = vld [vmem:[#allocation2 + $0x268] sm:$0xff]  ;;  %v2757_v15 = vld [vmem:[#allocation2 + $0x50] sm:$0xff]  ;;  %675 = vadd.xlane.f32.xlu1 %v2587_v53 }
 0x2e0   :  { %v644_v61 = vmul.f32 %v2723_v3, %v2574_v12  ;;  %3465 = vst [vmem:[#allocation54_spill] sm:$0xff] %v2751_v59  ;;  %v731_v42 = vadd.f32 %v631_v62, %v630_v47  ;;  %v728_v63 = vadd.f32 %v629_v14, %v628_v37  ;;  %v645_v6 = vmul.f32 %v2731_v51, %v2585_v33  ;;  %v2759_v56 = vld [vmem:[#allocation2 + $0x58] sm:$0xff]  ;;  %v570_v1 = vld [vmem:[#allocation2 + $0x1f0] sm:$0xff] }
 0x2e1   :  { %v662_v35 = vmul.f32 %v2733_v27, %v2595_v45  ;;  %3466 = vst [vmem:[#allocation55_spill] sm:$0xff] %v2757_v15  ;;  %3467 = vst [vmem:[#allocation56_spill] sm:$0xff] %v2759_v56  ;;  %696 = vadd.xlane.f32.xlu0 %v2597_v52  ;;  %v755_v3 = vadd.f32 %v647_v16, %v646_v2  ;;  %v663_v62 = vmul.f32 %v2741_v5, %v2622_v25  ;;  %v571_v37 = vld [vmem:[#allocation2 + $0x1f8] sm:$0xff]  ;;  %v586_v14 = vld [vmem:[#allocation2 + $0x270] sm:$0xff] }
 0x2e2   :  { %v660_v47 = vmul.f32 %v2743_v7, %v2574_v12  ;;  %v752_v51 = vadd.f32 %v645_v6, %v644_v61  ;;  %v661_v27 = vmul.f32 %v2751_v59, %v2585_v33  ;;  %v664_v11 = vmul.f32 %v584_v54, %v2485_v38  ;;  %v587_v53 = vld [vmem:[#allocation2 + $0x278] sm:$0xff] }
 0x2e3   :  { %v665_v21 = vmul.f32 %v585_v36, %v2487_v43  ;;  %v779_v8 = vadd.f32 %v663_v62, %v662_v35  ;;  %v598_v52 = vmul.f32 %v2757_v15, %v2595_v45  ;;  %v599_v2 = vmul.f32 %v2759_v56, %v2622_v25  ;;  %723 = vadd.xlane.f32.xlu1 %v2609_v0 }
 0x2e4   :  { %v650_v12 = vmul.f32 %v570_v1, %v2503_v26  ;;  %v776_v16 = vadd.f32 %v661_v27, %v660_v47  ;;  %v651_v6 = vmul.f32 %v571_v37, %v2514_v39  ;;  %v666_v33 = vmul.f32 %v586_v14, %v2503_v26 }
 0x2e5   :  { %v782_v5 = vadd.f32 %v665_v21, %v664_v11  ;;  %720 = vadd.xlane.f32.xlu0 %v2624_v41  ;;  %v683_v36 = vadd.f32 %v599_v2, %v598_v52  ;;  %v667_v38 = vmul.f32 %v587_v53, %v2514_v39  ;;  %v3468_v0 = vmov 0.0  }
 0x2e6   :  { %v761_v43 = vadd.f32 %v651_v6, %v650_v12  ;;  %2127 = vmatprep.mubr.msk.f32.mxu1 %vm2251_vm4, %v3468_v0 }
 0x2e7   :  { %v785_v54 = vadd.f32 %v667_v38, %v666_v33  ;;  %747 = vadd.xlane.f32.xlu1 %v2633_v28 }
 0x2e9   :  { %690 = vadd.xlane.f32.xlu0 %v2645_v58 }
 0x2eb   :  { %678 = vadd.xlane.f32.xlu1 %v2659_v22 }
 0x2ed   :  { %699 = vadd.xlane.f32.xlu0 %v2661_v48 }
 0x2ef   :  { %750 = vadd.xlane.f32.xlu1 %v2675_v23 }
 0x2f1   :  { %771 = vadd.xlane.f32.xlu0 %v2685_v32 }
 0x2f3   :  { %774 = vadd.xlane.f32.xlu1 %v2697_v13 }
 0x2f5   :  { %702 = vadd.xlane.f32.xlu0 %v2711_v4 }
 0x2f7   :  { %705 = vadd.xlane.f32.xlu1 %v2713_v34 }
 0x2f9   :  { %726 = vadd.xlane.f32.xlu0 %v725_v31  ;;  %v828_v31 = vlaneseq }
 0x2fb   :  { %708 = vadd.xlane.f32.xlu1 %v707_v46  ;;  %v829_v61 = vand.u32 127, %v828_v31  ;;  %v831_v37 = vshrl.u32 %v828_v31, 7 }
 0x2fd   :  { %681 = vadd.xlane.f32.xlu0 %v680_v50  ;;  %v834_v35 = vadd.s32 4294967288, %v829_v61  ;;  %v869_v14 = vadd.s32 4294967248, %v829_v61  ;;  %v876_v53 = vadd.s32 4294967240, %v829_v61  ;;  %v841_v52 = vadd.s32 4294967280, %v829_v61 }
 0x2fe   :  { %v848_v12 = vadd.s32 4294967272, %v829_v61  ;;  %v2850_v33 = vsub.s32 %v829_v61, %v831_v37  ;;  %v862_v38 = vadd.s32 4294967256, %v829_v61 }
 0x2ff   :  { %732 = vadd.xlane.f32.xlu1 %v731_v42  ;;  %v2844_v2 = vsub.s32 %v834_v35, %v831_v37  ;;  %v2856_v31 = vsub.s32 %v841_v52, %v831_v37 }
 0x300   :  { %v2861_v15 = vsub.s32 %v848_v12, %v831_v37 }
 0x301   :  { %729 = vadd.xlane.f32.xlu0 %v728_v63 }
 0x303   :  { %756 = vadd.xlane.f32.xlu1 %v755_v3 }
 0x305   :  { %753 = vadd.xlane.f32.xlu0 %v752_v51 }
 0x307   :  { %780 = vadd.xlane.f32.xlu1 %v779_v8 }
 0x309   :  { %777 = vadd.xlane.f32.xlu0 %v776_v16 }
 0x30b   :  { %783 = vadd.xlane.f32.xlu1 %v782_v5 }
 0x30d   :  { %684 = vadd.xlane.f32.xlu0 %v683_v36  ;;  %v855_v36 = vadd.s32 4294967264, %v829_v61 }
 0x311   :  { %762 = vadd.xlane.f32.xlu0 %v761_v43  ;;  %v2852_v43 = vsub.s32 %v869_v14, %v831_v37  ;;  %v2865_v14 = vsub.s32 %v855_v36, %v831_v37 }
 0x315   :  { %786 = vadd.xlane.f32.xlu0 %v785_v54  ;;  %v2854_v54 = vsub.s32 %v876_v53, %v831_v37  ;;  %v2867_v53 = vsub.s32 %v862_v38, %v831_v37 }
 0x350   :  { %v2792_v21 = vpop.xlane.xlu1 %717  ;;  %v2794_v22 = vpop.xlane.xlu0 %669 }
 0x351   :  { %v925_v61 = vrot.slane %v2792_v21, %v2850_v33 }
 0x354   :  { %v2796_v25 = vpop.xlane.xlu1 %687  ;;  %v2798_v26 = vpop.xlane.xlu0 %693 }
 0x355   :  { %v886_v21 = vrot.slane %v2798_v26, %v2850_v33 }
 0x358   :  { %v2800_v39 = vpop.xlane.xlu1 %672  ;;  %v2802_v34 = vpop.xlane.xlu0 %741 }
 0x359   :  { %v838_v56 = vrot.slane %v2800_v39, %v2844_v2  ;;  %v964_v39 = vrot.slane %v2802_v34, %v2850_v33 }
 0x35c   :  { %v2804_v48 = vpop.xlane.xlu1 %744  ;;  %v2806_v63 = vpop.xlane.xlu0 %765 }
 0x35d   :  { %v968_v26 = vrot.slane %v2804_v48, %v2844_v2 }
 0x360   :  { %v2808_v8 = vpop.xlane.xlu1 %768  ;;  %v2810_v11 = vpop.xlane.xlu0 %711 }
 0x364   :  { %v2812_v28 = vpop.xlane.xlu1 %714  ;;  %v2814_v45 = vpop.xlane.xlu0 %735 }
 0x368   :  { %v2816_v42 = vpop.xlane.xlu1 %738 }
 0x369   :  { %v2818_v4 = vpop.xlane.xlu0 %759 }
 0x36c   :  { %v2820_v41 = vpop.xlane.xlu1 %675 }
 0x36e   :  { %v2822_v32 = vpop.xlane.xlu0 %696 }
 0x36f   :  { %v890_v52 = vrot.slane %v2822_v32, %v2844_v2 }
 0x370   :  { %v2824_v13 = vpop.xlane.xlu1 %723 }
 0x371   :  { %v934_v12 = vrot.slane %v2824_v13, %v2856_v31  ;;  %v891_v34 = vsel %vm839_vm5, %v890_v52, %v886_v21 }
 0x372   :  { %v721_v58 = vpop.xlane.xlu0 %720 }
 0x373   :  { %v929_v35 = vrot.slane %v721_v58, %v2844_v2  ;;  %v833_v58 = vrot.slane %v2794_v22, %v2850_v33 }
 0x374   :  { %v2826_v3 = vpop.xlane.xlu1 %747 }
 0x375   :  { %v930_v37 = vsel %vm839_vm5, %v929_v35, %v925_v61  ;;  %v840_v38 = vsel %vm839_vm5, %v838_v56, %v833_v58  ;;  %v845_v61 = vrot.slane %v2820_v41, %v2856_v31 }
 0x376   :  { %v2828_v23 = vpop.xlane.xlu0 %690 }
 0x378   :  { %v2830_v27 = vpop.xlane.xlu1 %678 }
 0x37a   :  { %v2832_v46 = vpop.xlane.xlu0 %699 }
 0x37b   :  { %v895_v36 = vrot.slane %v2832_v46, %v2856_v31  ;;  %v1003_v46 = vrot.slane %v2806_v63, %v2850_v33 }
 0x37c   :  { %v2834_v50 = vpop.xlane.xlu1 %750 }
 0x37d   :  { %v896_v35 = vsel %vm846_vm6, %v895_v36, %v891_v34  ;;  %v978_v63 = vrot.slane %v2834_v50, %v2861_v15  ;;  %v915_v50 = vrot.slane %v2810_v11, %v2852_v43 }
 0x37e   :  { %v2836_v1 = vpop.xlane.xlu0 %771 }
 0x37f   :  { %v1012_v11 = vrot.slane %v2836_v1, %v2856_v31 }
 0x380   :  { %v2838_v51 = vpop.xlane.xlu1 %774 }
 0x382   :  { %v2840_v5 = vpop.xlane.xlu0 %702 }
 0x383   :  { %v900_v32 = vrot.slane %v2840_v5, %v2861_v15  ;;  %v935_v5 = vsel %vm846_vm6, %v934_v12, %v930_v37  ;;  %v969_v12 = vsel %vm839_vm5, %v968_v26, %v964_v39  ;;  %v847_v26 = vsel %vm846_vm6, %v845_v61, %v840_v38 }
 0x384   :  { %v2842_v62 = vpop.xlane.xlu1 %705  ;;  %v3469_v61 = vrot.slane %v2796_v25, %v2852_v43 }
 0x385   :  { %v905_v56 = vrot.slane %v2842_v62, %v2865_v14 }
 0x386   :  { %v727_v47 = vpop.xlane.xlu0 %726 }
 0x387   :  { %v939_v22 = vrot.slane %v727_v47, %v2861_v15  ;;  %v1007_v47 = vrot.slane %v2808_v8, %v2844_v2 }
 0x388   :  { %v2846_v16 = vpop.xlane.xlu1 %708 }
 0x389   :  { %v910_v48 = vrot.slane %v2846_v16, %v2867_v53  ;;  %v940_v8 = vsel %vm853_vm7, %v939_v22, %v935_v5  ;;  %v1008_v41 = vsel %vm839_vm5, %v1007_v47, %v1003_v46  ;;  %v1017_v46 = vrot.slane %v2838_v51, %v2861_v15 }
 0x38a   :  { %v2848_v6 = vpop.xlane.xlu0 %681  ;;  %v880_v5 = vrot.slane %v2828_v23, %v2854_v54 }
 0x38b   :  { %v859_v22 = vrot.slane %v2848_v6, %v2865_v14 }
 0x38c   :  { %v733_v59 = vpop.xlane.xlu1 %732 }
 0x38d   :  { %v949_v62 = vrot.slane %v733_v59, %v2867_v53  ;;  %v852_v59 = vrot.slane %v2830_v27, %v2861_v15 }
 0x38e   :  { %v730_v7 = vpop.xlane.xlu0 %729 }
 0x38f   :  { %v944_v13 = vrot.slane %v730_v7, %v2865_v14  ;;  %v973_v7 = vrot.slane %v2826_v3, %v2856_v31  ;;  %v901_v3 = vsel %vm853_vm7, %v900_v32, %v896_v35  ;;  %v854_v1 = vsel %vm853_vm7, %v852_v59, %v847_v26 }
 0x390   :  { %v757_v55 = vpop.xlane.xlu1 %756  ;;  %v906_v21 = vsel %vm3418_vm8, %v905_v56, %v901_v3  ;;  %v920_v56 = vrot.slane %v2812_v28, %v2854_v54  ;;  %v861_v38 = vsel %vm3418_vm8, %v859_v22, %v854_v1  ;;  %v1013_v28 = vsel %vm846_vm6, %v1012_v11, %v1008_v41 }
 0x391   :  { %v945_v58 = vsel %vm3418_vm8, %v944_v13, %v940_v8  ;;  %v974_v36 = vsel %vm846_vm6, %v973_v7, %v969_v12  ;;  %v988_v32 = vrot.slane %v757_v55, %v2867_v53  ;;  %v954_v13 = vrot.slane %v2814_v45, %v2852_v43 }
 0x392   :  { %v754_v49 = vpop.xlane.xlu0 %753  ;;  %v979_v39 = vsel %vm853_vm7, %v978_v63, %v974_v36  ;;  %v950_v27 = vsel %vm867_vm9, %v949_v62, %v945_v58  ;;  %v959_v45 = vrot.slane %v2816_v42, %v2854_v54  ;;  %v993_v8 = vrot.slane %v2818_v4, %v2852_v43 }
 0x393   :  { %v983_v52 = vrot.slane %v754_v49, %v2865_v14  ;;  %v911_v49 = vsel %vm867_vm9, %v910_v48, %v906_v21  ;;  %v955_v7 = vsel %vm874_vm10, %v954_v13, %v950_v27  ;;  %v1018_v42 = vsel %vm853_vm7, %v1017_v46, %v1013_v28  ;;  %v2184_v46 = vld [vmem:[%s3352_s1] sm:$0xff] }
 0x394   :  { %v781_v37 = vpop.xlane.xlu1 %780  ;;  %v916_v34 = vsel %vm874_vm10, %v915_v50, %v911_v49  ;;  %v2252_v26 = vmov 1.0  }
 0x395   :  { %v984_v47 = vsel %vm3418_vm8, %v983_v52, %v979_v39  ;;  %v921_v62 = vsel %vm881_vm11, %v920_v56, %v916_v34  ;;  %v1027_v58 = vrot.slane %v781_v37, %v2867_v53  ;;  %v2102_v37 = vld [vmem:[%s3351_s0 + $0x8] sm:$0xff] }
 0x396   :  { %v778_v16 = vpop.xlane.xlu0 %777  ;;  %v989_v48 = vsel %vm867_vm9, %v988_v32, %v984_v47  ;;  %v1145_v27 = vcombine.high %v2102_v37, %v2102_v37  ;;  %v2185_v47 = vld [vmem:[%s3352_s1 + $0x8] sm:$0xff] }
 0x397   :  { %v1022_v51 = vrot.slane %v778_v16, %v2865_v14  ;;  %v960_v16 = vsel %vm881_vm11, %v959_v45, %v955_v7  ;;  %v994_v59 = vsel %vm874_vm10, %v993_v8, %v989_v48 }
 0x398   :  { %v784_v35 = vpop.xlane.xlu1 %783 }
 0x399   :  { %v1023_v4 = vsel %vm3418_vm8, %v1022_v51, %v1018_v42  ;;  %v1032_v50 = vrot.slane %v784_v35, %v2852_v43  ;;  %vm1047_vm8 = vcmask 523264  }
 0x39a   :  { %v685_v6 = vpop.xlane.xlu0 %684  ;;  %v1028_v22 = vsel %vm867_vm9, %v1027_v58, %v1023_v4 }
 0x39b   :  { %v866_v55 = vrot.slane %v685_v6, %v2867_v53  ;;  %v1033_v11 = vsel %vm874_vm10, %v1032_v50, %v1028_v22 }
 0x39d   :  { %v868_v63 = vsel %vm867_vm9, %v866_v55, %v861_v38 }
 0x39e   :  { %v875_v3 = vsel %vm874_vm10, %v3469_v61, %v868_v63  ;;  %v763_v23 = vpop.xlane.xlu0 %762  ;;  %v2189_v61 = vld [vmem:[%s3354_s3 + $0x18] sm:$0xff] }
 0x39f   :  { %v882_v52 = vsel %vm881_vm11, %v880_v5, %v875_v3  ;;  %v998_v12 = vrot.slane %v763_v23, %v2854_v54 }
 0x3a0   :  { %v1040_v21 = vsel %vm1039_vm12, %v921_v62, %v882_v52  ;;  %v2188_v62 = vld [vmem:[%s3354_s3 + $0x10] sm:$0xff] }
 0x3a1   :  { %v1042_v25 = vsel %vm1041_vm13, %v960_v16, %v1040_v21  ;;  %v999_v41 = vsel %vm881_vm11, %v998_v12, %v994_v59 }
 0x3a2   :  { %v1044_v36 = vsel %vm1043_vm14, %v999_v41, %v1042_v25  ;;  %v787_v49 = vpop.xlane.xlu0 %786 }
 0x3a3   :  { %v1037_v39 = vrot.slane %v787_v49, %v2854_v54 }
 0x3a5   :  { %v1038_v32 = vsel %vm881_vm11, %v1037_v39, %v1033_v11 }
 0x3a6   :  { %v1046_v13 = vsel %vm1045_vm15, %v1038_v32, %v1044_v36 }
 0x3a7   :  { %2126 = vmatpush3.xpose.msk.msra.mxu1 %vm1047_vm8, %v1046_v13 }
 0x3a8   :  { %2103 = vmatprep.subr.msk.mxu1 %vm98_vm0, %v1145_v27 }
 0x3aa   :  { %2128 = vmatmul.mubr.msk.f32.vlgmr.msra.gmra.mrb[12].mxu1 %vm1047_vm8, %v2252_v26 }
 0x3ab   :  { %2104 = vmatpush1.msk.msra.mxu1 %vm98_vm0, %v2102_v37  ;;  %1214 = vmatprep.mubr.f32.mxu1 %v3468_v0  ;;  %vm1123_vm0 = vcmask 24576  }
 0x3ae   :  { %2105 = vmatmul.mubr.msk.f32.vlgmr.msra.gmra.mrb[14].mxu1 %vm91_vm1, %v2184_v46 }
 0x3af   :  { %1220 = vmatprep.mubr.f32.mxu1 %v3468_v0 }
 0x3b2   :  { %2106 = vmatmul.mubr.msk.f32.gmra.mrb[16].mxu1 %vm91_vm1, %v2185_v47  ;;  %vm3519_vm1 = vcmask 326912  }
 0x3b3   :  { %1295 = vmatprep.mubr.f32.mxu1 %v3468_v0 }
 0x47d   :  { %v2993_v6 = vpop.f32.mrb[12].mxu1 }
 0x47e   :  { %v2129_v56 = vpop.f32.mrb[13].mxu1 }
 0x481   :  { %v1216_v1 = vpop.f32.mrb[14].mxu1 }
 0x482   :  { %v1218_v34 = vpop.f32.mrb[15].mxu1  ;;  %v1217_v55 = vadd.f32 %v1216_v1, %v2381_v20 }
 0x483   :  { %v1219_v45 = vadd.f32 %v1218_v34, %v2381_v20  ;;  %v2186_v20 = vld [vmem:[%s3354_s3] sm:$0xff] }
 0x484   :  { %v1227_v28 = vmax.f32 %v1217_v55, 0.0  ;;  %v2192_v55 = vld [vmem:[%s3356_s5 + $0x10] sm:$0xff] }
 0x485   :  { %v1222_v38 = vpop.f32.mrb[16].mxu1  ;;  %v1228_v35 = vmax.f32 %v1219_v45, 0.0  ;;  %v2193_v45 = vld [vmem:[%s3356_s5 + $0x18] sm:$0xff] }
 0x486   :  { %v1223_v7 = vadd.f32 %v1222_v38, %v2384_v24  ;;  %v1224_v51 = vpop.f32.mrb[17].mxu1  ;;  %v2194_v38 = vld [vmem:[%s3356_s5 + $0x20] sm:$0xff] }
 0x487   :  { %v1225_v5 = vadd.f32 %v1224_v51, %v2384_v24  ;;  %v2187_v24 = vld [vmem:[%s3354_s3 + $0x8] sm:$0xff]  ;;  %v2196_v51 = vld [vmem:[%s3356_s5 + $0x30] sm:$0xff] }
 0x488   :  { %v1229_v48 = vmax.f32 %v1223_v7, 0.0  ;;  %v2195_v7 = vld [vmem:[%s3356_s5 + $0x28] sm:$0xff] }
 0x489   :  { %v1230_v63 = vmax.f32 %v1225_v5, 0.0  ;;  %v2197_v5 = vld [vmem:[%s3356_s5 + $0x38] sm:$0xff] }
 0x48a   :  { %v2149_v8 = vpack.c.bf16 %v1229_v48, %v1227_v28 }
 0x48b   :  { %v2147_v42 = vpack.c.bf16 %v1230_v63, %v1228_v35 }
 0x48d   :  { %2148 = vmatprep.subr.bf16.mxu1 %v2147_v42 }
 0x48e   :  { %2150 = vmatpush1.bf16.msra.mxu1 %v2149_v8  ;;  %v1457_v8 = vld [vmem:[#allocation2] sm:$0xff] }
 0x48f   :  { %2130 = vmatprep.subr.mxu1 %v3468_v0 }
 0x491   :  { %2107 = vmatmul.mubr.msk.f32.vlgmr.msra.gmra.mrb[18].mxu1 %vm204_vm2, %v2186_v20  ;;  %v1458_v20 = vld [vmem:[#allocation2 + $0x8] sm:$0xff] }
 0x492   :  { %1301 = vmatprep.mubr.f32.mxu1 %v3468_v0 }
 0x495   :  { %2108 = vmatmul.mubr.msk.f32.gmra.mrb[20].mxu1 %vm204_vm2, %v2187_v24 }
 0x496   :  { %1307 = vmatprep.mubr.f32.mxu1 %v3468_v0 }
 0x499   :  { %2109 = vmatmul.mubr.msk.f32.gmra.mrb[22].mxu1 %vm204_vm2, %v2188_v62 }
 0x49a   :  { %1313 = vmatprep.mubr.f32.mxu1 %v3468_v0 }
 0x49d   :  { %2110 = vmatmul.mubr.msk.f32.gmra.mrb[24].mxu1 %vm204_vm2, %v2189_v61  ;;  %v1473_v61 = vld [vmem:[#allocation2 + $0x80] sm:$0xff]  ;;  %vm3520_vm2 = vmmov %vm3519_vm1 }
 0x49e   :  { %2132 = vmatprep.mubr.msk.f32.mxu1 %vm2251_vm4, %v3468_v0  ;;  %vm3522_vm4 = vmmov %vm3519_vm1 }
 0x564   :  { %v1297_v3 = vpop.f32.mrb[18].mxu1 }
 0x565   :  { %v1299_v23 = vpop.f32.mrb[19].mxu1  ;;  %v1298_v58 = vadd.f32 %v1297_v3, %v2409_v40  ;;  %v1474_v3 = vld [vmem:[#allocation2 + $0x88] sm:$0xff] }
 0x566   :  { %v1300_v52 = vadd.f32 %v1299_v23, %v2409_v40 }
 0x567   :  { %v1320_v59 = vmax.f32 %v1298_v58, 0.0 }
 0x568   :  { %v1303_v16 = vpop.f32.mrb[20].mxu1  ;;  %v1321_v25 = vmax.f32 %v1300_v52, 0.0 }
 0x569   :  { %v1304_v12 = vadd.f32 %v1303_v16, %v2412_v44  ;;  %v1305_v4 = vpop.f32.mrb[21].mxu1 }
 0x56a   :  { %v1306_v50 = vadd.f32 %v1305_v4, %v2412_v44 }
 0x56b   :  { %v1322_v21 = vmax.f32 %v1304_v12, 0.0 }
 0x56c   :  { %v1323_v41 = vmax.f32 %v1306_v50, 0.0  ;;  %v1309_v37 = vpop.f32.mrb[22].mxu1 }
 0x56d   :  { %v2153_v36 = vpack.c.bf16 %v1322_v21, %v1320_v59  ;;  %v1311_v49 = vpop.f32.mrb[23].mxu1  ;;  %v1310_v39 = vadd.f32 %v1309_v37, %v2417_v57  ;;  %v1459_v21 = vld [vmem:[#allocation2 + $0x10] sm:$0xff] }
 0x56e   :  { %v2151_v22 = vpack.c.bf16 %v1323_v41, %v1321_v25  ;;  %v1312_v11 = vadd.f32 %v1311_v49, %v2417_v57  ;;  %v2190_v57 = vld [vmem:[%s3356_s5] sm:$0xff]  ;;  %v1490_v25 = vld [vmem:[#allocation2 + $0x108] sm:$0xff]  ;;  %v1460_v49 = vld [vmem:[#allocation2 + $0x18] sm:$0xff] }
 0x56f   :  { %v1324_v13 = vmax.f32 %v1310_v39, 0.0 }
 0x570   :  { %v1315_v27 = vpop.f32.mrb[24].mxu1  ;;  %2152 = vmatprep.subr.bf16.mxu0 %v2151_v22  ;;  %v1325_v47 = vmax.f32 %v1312_v11, 0.0 }
 0x571   :  { %v1316_v40 = vadd.f32 %v1315_v27, %v2420_v60  ;;  %v1317_v32 = vpop.f32.mrb[25].mxu1  ;;  %2154 = vmatpush1.bf16.msra.mxu0 %v2153_v36 }
 0x572   :  { %v1318_v44 = vadd.f32 %v1317_v32, %v2420_v60  ;;  %v2191_v60 = vld [vmem:[%s3356_s5 + $0x8] sm:$0xff] }
 0x573   :  { %v1326_v46 = vmax.f32 %v1316_v40, 0.0 }
 0x574   :  { %v1327_v56 = vmax.f32 %v1318_v44, 0.0 }
 0x575   :  { %v2157_v1 = vpack.c.bf16 %v1326_v46, %v1324_v13 }
 0x576   :  { %v2155_v34 = vpack.c.bf16 %v1327_v56, %v1325_v47  ;;  %v3470_v56 = vld [vmem:[#allocation15_spill] sm:$0xff] }
 0x578   :  { %2156 = vmatprep.subr.bf16.mxu0 %v2155_v34  ;;  %v1523_v34 = vld [vmem:[#allocation2 + $0x210] sm:$0xff] }
 0x579   :  { %2158 = vmatpush1.bf16.msra.mxu0 %v2157_v1 }
 0x57c   :  { %2111 = vmatmul.mubr.msk.f32.vlgmr.msra.gmra.mrb[16].mxu0 %vm354_vm3, %v2190_v57 }
 0x57d   :  { %1398 = vmatprep.mubr.f32.mxu0 %v3468_v0 }
 0x580   :  { %2112 = vmatmul.mubr.msk.f32.gmra.mrb[18].mxu0 %vm354_vm3, %v2191_v60 }
 0x581   :  { %1404 = vmatprep.mubr.f32.mxu0 %v3468_v0 }
 0x584   :  { %2113 = vmatmul.mubr.msk.f32.gmra.mrb[20].mxu0 %vm354_vm3, %v2192_v55  ;;  %v3471_v55 = vld [vmem:[#allocation16_spill] sm:$0xff] }
 0x585   :  { %1410 = vmatprep.mubr.f32.mxu0 %v3468_v0 }
 0x588   :  { %2114 = vmatmul.mubr.msk.f32.gmra.mrb[22].mxu0 %vm354_vm3, %v2193_v45 }
 0x589   :  { %1416 = vmatprep.mubr.f32.mxu0 %v3468_v0 }
 0x58c   :  { %2115 = vmatmul.mubr.msk.f32.gmra.mrb[24].mxu0 %vm354_vm3, %v2194_v38 }
 0x58d   :  { %1422 = vmatprep.mubr.f32.mxu0 %v3468_v0 }
 0x590   :  { %2116 = vmatmul.mubr.msk.f32.gmra.mrb[26].mxu0 %vm354_vm3, %v2195_v7  ;;  %v1524_v7 = vld [vmem:[#allocation2 + $0x218] sm:$0xff] }
 0x591   :  { %1428 = vmatprep.mubr.f32.mxu0 %v3468_v0 }
 0x594   :  { %2117 = vmatmul.mubr.msk.f32.gmra.mrb[28].mxu0 %vm354_vm3, %v2196_v51 }
 0x595   :  { %1434 = vmatprep.mubr.f32.mxu0 %v3468_v0  ;;  %v1489_v0 = vld [vmem:[#allocation2 + $0x100] sm:$0xff] }
 0x598   :  { %2118 = vmatmul.mubr.msk.f32.gmra.mrb[30].mxu0 %vm354_vm3, %v2197_v5  ;;  %vm3521_vm3 = vmmov %vm3519_vm1 }
 0x64f   :  { %v1394_v28 = vpop.f32.mrb[16].mxu0 }
 0x650   :  { %v1395_v48 = vadd.f32 %v1394_v28, %v2465_v17  ;;  %v1396_v35 = vpop.f32.mrb[17].mxu0 }
 0x651   :  { %v1397_v63 = vadd.f32 %v1396_v35, %v2465_v17  ;;  %v3472_v35 = vld [vmem:[#allocation19_spill] sm:$0xff] }
 0x652   :  { %v1441_v42 = vmax.f32 %v1395_v48, 0.0 }
 0x653   :  { %v1442_v24 = vmax.f32 %v1397_v63, 0.0  ;;  %v1400_v62 = vpop.f32.mrb[18].mxu0 }
 0x654   :  { %v1401_v23 = vadd.f32 %v1400_v62, %v2467_v18  ;;  %v1402_v58 = vpop.f32.mrb[19].mxu0  ;;  %v1585_v52 = vmul.f32 %v1441_v42, %v2499_v9  ;;  %v1537_v16 = vmul.f32 %v1457_v8, %v1441_v42  ;;  %v1601_v12 = vmul.f32 %v1441_v42, %v2507_v29  ;;  %v1507_v29 = vld [vmem:[#allocation2 + $0x190] sm:$0xff]  ;;  %v3473_v8 = vld [vmem:[#allocation8_spill] sm:$0xff] }
 0x655   :  { %v1403_v4 = vadd.f32 %v1402_v58, %v2467_v18  ;;  %v1586_v17 = vmul.f32 %v1442_v24, %v2501_v10  ;;  %v1538_v50 = vmul.f32 %v1458_v20, %v1442_v24  ;;  %v1602_v59 = vmul.f32 %v1442_v24, %v2509_v30  ;;  %v1508_v30 = vld [vmem:[#allocation2 + $0x198] sm:$0xff] }
 0x656   :  { %v1443_v41 = vmax.f32 %v1401_v23, 0.0  ;;  %v1553_v37 = vmul.f32 %v1473_v61, %v1441_v42  ;;  %v1554_v36 = vmul.f32 %v1474_v3, %v1442_v24  ;;  %v1569_v22 = vmul.f32 %v1489_v0, %v1441_v42 }
 0x657   :  { %v1444_v39 = vmax.f32 %v1403_v4, 0.0  ;;  %v1406_v11 = vpop.f32.mrb[20].mxu0  ;;  %v1689_v9 = vadd.f32 %v1586_v17, %v1585_v52  ;;  %v1617_v27 = vadd.f32 %v1538_v50, %v1537_v16  ;;  %v1713_v40 = vadd.f32 %v1602_v59, %v1601_v12  ;;  %v3475_v16 = vld [vmem:[#allocation25_spill] sm:$0xff]  ;;  %v3476_v4 = vld [vmem:[#allocation26_spill] sm:$0xff] }
 0x658   :  { %v1407_v18 = vadd.f32 %v1406_v11, %v2469_v19  ;;  %v1408_v32 = vpop.f32.mrb[21].mxu0  ;;  %v1641_v10 = vadd.f32 %v1554_v36, %v1553_v37  ;;  %v1539_v44 = vmul.f32 %v1459_v21, %v1443_v41  ;;  %v1570_v13 = vmul.f32 %v1490_v25, %v1442_v24  ;;  %v3474_v24 = vld [vmem:[#allocation20_spill] sm:$0xff]  ;;  %v3477_v25 = vld [vmem:[#allocation13_spill] sm:$0xff]  ;;  %v3478_v36 = vld [vmem:[#allocation14_spill] sm:$0xff] }
 0x659   :  { %v1409_v46 = vadd.f32 %v1408_v32, %v2469_v19  ;;  %1690 = vadd.xlane.f32.xlu0 %v1689_v9  ;;  %1618 = vadd.xlane.f32.xlu1 %v1617_v27  ;;  %v1540_v47 = vmul.f32 %v1460_v49, %v1444_v39  ;;  %v1555_v1 = vmul.f32 %v1443_v41, %v3470_v56  ;;  %v3480_v27 = vld [vmem:[#allocation29_spill] sm:$0xff] }
 0x65a   :  { %v1445_v57 = vmax.f32 %v1407_v18, 0.0  ;;  %v1665_v60 = vadd.f32 %v1570_v13, %v1569_v22  ;;  %v1556_v45 = vmul.f32 %v1444_v39, %v3471_v55  ;;  %v1587_v38 = vmul.f32 %v1507_v29, %v1443_v41  ;;  %v3484_v56 = vld [vmem:[#allocation33_spill] sm:$0xff] }
 0x65b   :  { %v1446_v51 = vmax.f32 %v1409_v46, 0.0  ;;  %v1412_v5 = vpop.f32.mrb[22].mxu0  ;;  %v1620_v28 = vadd.f32 %v1540_v47, %v1539_v44  ;;  %v1588_v48 = vmul.f32 %v1508_v30, %v1444_v39  ;;  %v1571_v63 = vmul.f32 %v1443_v41, %v3472_v35  ;;  %v3483_v46 = vld [vmem:[#allocation18_spill] sm:$0xff] }
 0x65c   :  { %v1413_v19 = vadd.f32 %v1412_v5, %v3473_v8  ;;  %v1414_v42 = vpop.f32.mrb[23].mxu0  ;;  %v1644_v20 = vadd.f32 %v1556_v45, %v1555_v1  ;;  %v1572_v62 = vmul.f32 %v1444_v39, %v3474_v24  ;;  %v1603_v61 = vmul.f32 %v1523_v34, %v1443_v41  ;;  %v3479_v41 = vld [vmem:[#allocation9_spill] sm:$0xff]  ;;  %v3485_v45 = vld [vmem:[#allocation34_spill] sm:$0xff] }
 0x65d   :  { %v1415_v3 = vadd.f32 %v1414_v42, %v3473_v8  ;;  %1714 = vadd.xlane.f32.xlu0 %v1713_v40  ;;  %1642 = vadd.xlane.f32.xlu1 %v1641_v10  ;;  %v1692_v0 = vadd.f32 %v1588_v48, %v1587_v38  ;;  %v1604_v23 = vmul.f32 %v1524_v7, %v1444_v39  ;;  %v3481_v39 = vld [vmem:[#allocation30_spill] sm:$0xff]  ;;  %v3482_v10 = vld [vmem:[#allocation17_spill] sm:$0xff] }
 0x65e   :  { %v1447_v58 = vmax.f32 %v1413_v19, 0.0  ;;  %v1668_v52 = vadd.f32 %v1572_v62, %v1571_v63  ;;  %v1557_v12 = vmul.f32 %v1445_v57, %v3475_v16  ;;  %v1558_v17 = vmul.f32 %v1446_v51, %v3476_v4  ;;  %v3486_v7 = vld [vmem:[#allocation21_spill] sm:$0xff]  ;;  %v3487_v48 = vld [vmem:[#allocation22_spill] sm:$0xff] }
 0x65f   :  { %v1448_v50 = vmax.f32 %v1415_v3, 0.0  ;;  %v1418_v59 = vpop.f32.mrb[24].mxu0  ;;  %v1716_v21 = vadd.f32 %v1604_v23, %v1603_v61  ;;  %v1541_v37 = vmul.f32 %v1445_v57, %v3477_v25  ;;  %v1542_v49 = vmul.f32 %v1446_v51, %v3478_v36  ;;  %v3488_v63 = vld [vmem:[#allocation37_spill] sm:$0xff]  ;;  %v3489_v19 = vld [vmem:[#allocation38_spill] sm:$0xff] }
 0x660   :  { %v1419_v22 = vadd.f32 %v1418_v59, %v3479_v41  ;;  %v1420_v11 = vpop.f32.mrb[25].mxu0  ;;  %v1647_v9 = vadd.f32 %v1558_v17, %v1557_v12  ;;  %v1605_v40 = vmul.f32 %v1445_v57, %v3480_v27  ;;  %v1606_v29 = vmul.f32 %v1446_v51, %v3481_v39  ;;  %v3490_v24 = vld [vmem:[#allocation10_spill] sm:$0xff]  ;;  %v3492_v12 = vld [vmem:[#allocation24_spill] sm:$0xff]  ;;  %v3493_v59 = vld [vmem:[#allocation41_spill] sm:$0xff] }
 0x661   :  { %v1421_v18 = vadd.f32 %v1420_v11, %v3479_v41  ;;  %1621 = vadd.xlane.f32.xlu0 %v1620_v28  ;;  %1666 = vadd.xlane.f32.xlu1 %v1665_v60  ;;  %v1623_v32 = vadd.f32 %v1542_v49, %v1541_v37  ;;  %v1573_v44 = vmul.f32 %v1445_v57, %v3482_v10  ;;  %v3494_v37 = vld [vmem:[#allocation42_spill] sm:$0xff]  ;;  %v3495_v49 = vld [vmem:[#allocation27_spill] sm:$0xff]  ;;  %v3497_v27 = vld [vmem:[#allocation28_spill] sm:$0xff] }
 0x662   :  { %v1449_v13 = vmax.f32 %v1419_v22, 0.0  ;;  %v3093_v30 = vadd.f32 %v1606_v29, %v1605_v40  ;;  %v1574_v47 = vmul.f32 %v1446_v51, %v3483_v46  ;;  %v1559_v1 = vmul.f32 %v1447_v58, %v3484_v56  ;;  %v3498_v39 = vld [vmem:[#allocation45_spill] sm:$0xff]  ;;  %v3499_v46 = vld [vmem:[#allocation46_spill] sm:$0xff] }
 0x663   :  { %v1450_v34 = vmax.f32 %v1421_v18, 0.0  ;;  %v1424_v55 = vpop.f32.mrb[26].mxu0  ;;  %v1560_v38 = vmul.f32 %v1448_v50, %v3485_v45  ;;  %v1589_v5 = vmul.f32 %v1445_v57, %v3486_v7  ;;  %v1590_v35 = vmul.f32 %v1446_v51, %v3487_v48  ;;  %v3491_v51 = vld [vmem:[#allocation23_spill] sm:$0xff] }
 0x664   :  { %v1426_v28 = vpop.f32.mrb[27].mxu0  ;;  %v3100_v60 = vadd.f32 %v1574_v47, %v1573_v44  ;;  %v1575_v8 = vmul.f32 %v1447_v58, %v3488_v63  ;;  %v1576_v42 = vmul.f32 %v1448_v50, %v3489_v19  ;;  %v1425_v62 = vadd.f32 %v1424_v55, %v3490_v24  ;;  %v3500_v55 = vld [vmem:[#allocation31_spill] sm:$0xff] }
 0x665   :  { %1645 = vadd.xlane.f32.xlu0 %v1644_v20  ;;  %1693 = vadd.xlane.f32.xlu1 %v1692_v0  ;;  %v3105_v61 = vadd.f32 %v1560_v38, %v1559_v1  ;;  %v3107_v3 = vadd.f32 %v1590_v35, %v1589_v5  ;;  %v1427_v23 = vadd.f32 %v1426_v28, %v3490_v24  ;;  %v3496_v0 = vld [vmem:[#allocation11_spill] sm:$0xff]  ;;  %v3501_v38 = vld [vmem:[#allocation32_spill] sm:$0xff]  ;;  %v3502_v28 = vld [vmem:[#allocation49_spill] sm:$0xff] }
 0x666   :  { %v3110_v57 = vadd.f32 %v1576_v42, %v1575_v8  ;;  %v1543_v16 = vmul.f32 %v1447_v58, %v3491_v51  ;;  %v1544_v4 = vmul.f32 %v1448_v50, %v3492_v12  ;;  %v1545_v25 = vmul.f32 %v1449_v13, %v3493_v59  ;;  %v3504_v8 = vld [vmem:[#allocation12_spill] sm:$0xff] }
 0x667   :  { %v1430_v17 = vpop.f32.mrb[28].mxu0  ;;  %v1546_v36 = vmul.f32 %v1450_v34, %v3494_v37  ;;  %v1591_v20 = vmul.f32 %v1447_v58, %v3495_v49  ;;  %v1592_v40 = vmul.f32 %v1448_v50, %v3497_v27  ;;  %v1577_v29 = vmul.f32 %v1449_v13, %v3498_v39  ;;  %v3506_v51 = vld [vmem:[#allocation36_spill] sm:$0xff]  ;;  %v3508_v37 = vld [vmem:[#allocation54_spill] sm:$0xff]  ;;  %v3509_v49 = vld [vmem:[#allocation39_spill] sm:$0xff] }
 0x668   :  { %v1431_v41 = vadd.f32 %v1430_v17, %v3496_v0  ;;  %v1432_v22 = vpop.f32.mrb[29].mxu0  ;;  %v3118_v11 = vadd.f32 %v1544_v4, %v1543_v16  ;;  %v1451_v18 = vmax.f32 %v1425_v62, 0.0  ;;  %v1578_v47 = vmul.f32 %v1450_v34, %v3499_v46  ;;  %v3505_v62 = vld [vmem:[#allocation35_spill] sm:$0xff]  ;;  %v3507_v4 = vld [vmem:[#allocation53_spill] sm:$0xff] }
 0x669   :  { %v1433_v10 = vadd.f32 %v1432_v22, %v3496_v0  ;;  %1669 = vadd.xlane.f32.xlu0 %v1668_v52  ;;  %1717 = vadd.xlane.f32.xlu1 %v1716_v21  ;;  %v3123_v44 = vadd.f32 %v1546_v36, %v1545_v25  ;;  %v1452_v56 = vmax.f32 %v1427_v23, 0.0  ;;  %v3126_v1 = vadd.f32 %v1592_v40, %v1591_v20  ;;  %v3503_v52 = vld [vmem:[#allocation50_spill] sm:$0xff]  ;;  %v1485_v59 = vld [vmem:[#allocation2 + $0xe0] sm:$0xff]  ;;  %v1486_v0 = vld [vmem:[#allocation2 + $0xe8] sm:$0xff] }
 0x66a   :  { %v1607_v45 = vmul.f32 %v1447_v58, %v3500_v55  ;;  %v1608_v7 = vmul.f32 %v1448_v50, %v3501_v38  ;;  %v3130_v5 = vmax.f32 %v1431_v41, 0.0  ;;  %v3132_v35 = vadd.f32 %v1578_v47, %v1577_v29  ;;  %v3510_v22 = vld [vmem:[#allocation40_spill] sm:$0xff]  ;;  %v3511_v40 = vld [vmem:[#allocation55_spill] sm:$0xff] }
 0x66b   :  { %v1436_v48 = vpop.f32.mrb[30].mxu0  ;;  %v1593_v63 = vmul.f32 %v1449_v13, %v3502_v28  ;;  %v1594_v21 = vmul.f32 %v1450_v34, %v3503_v52  ;;  %v1561_v23 = vmul.f32 %v1449_v13, %v3505_v62  ;;  %v1562_v58 = vmul.f32 %v1450_v34, %v3506_v51  ;;  %v3512_v29 = vld [vmem:[#allocation56_spill] sm:$0xff]  ;;  %v3513_v46 = vld [vmem:[#allocation43_spill] sm:$0xff] }
 0x66c   :  { %v1437_v19 = vadd.f32 %v1436_v48, %v3504_v8  ;;  %v1438_v42 = vpop.f32.mrb[31].mxu0  ;;  %v3137_v24 = vadd.f32 %v1608_v7, %v1607_v45  ;;  %v3141_v16 = vmax.f32 %v1433_v10, 0.0  ;;  %v1609_v17 = vmul.f32 %v1449_v13, %v3507_v4  ;;  %v3514_v47 = vld [vmem:[#allocation44_spill] sm:$0xff] }
 0x66d   :  { %v1439_v50 = vadd.f32 %v1438_v42, %v3504_v8  ;;  %1648 = vadd.xlane.f32.xlu0 %v1647_v9  ;;  %1624 = vadd.xlane.f32.xlu1 %v1623_v32  ;;  %v3144_v12 = vadd.f32 %v1594_v21, %v1593_v63  ;;  %v3147_v25 = vadd.f32 %v1562_v58, %v1561_v23  ;;  %v1501_v32 = vld [vmem:[#allocation2 + $0x160] sm:$0xff]  ;;  %v1518_v52 = vld [vmem:[#allocation2 + $0x1e8] sm:$0xff] }
 0x66e   :  { %v1610_v36 = vmul.f32 %v1450_v34, %v3508_v37  ;;  %v1563_v20 = vmul.f32 %v1451_v18, %v3509_v49  ;;  %v1455_v41 = vmax.f32 %v1437_v19, 0.0  ;;  %v1564_v27 = vmul.f32 %v1452_v56, %v3510_v22  ;;  %v1502_v34 = vld [vmem:[#allocation2 + $0x168] sm:$0xff]  ;;  %v1517_v63 = vld [vmem:[#allocation2 + $0x1e0] sm:$0xff]  ;;  %v1471_v37 = vld [vmem:[#allocation2 + $0x70] sm:$0xff] }
 0x66f   :  { %v1547_v39 = vmul.f32 %v1451_v18, %v3511_v40  ;;  %v1548_v9 = vmul.f32 %v1452_v56, %v3512_v29  ;;  %v1579_v13 = vmul.f32 %v1451_v18, %v3513_v46  ;;  %v1580_v55 = vmul.f32 %v1452_v56, %v3514_v47  ;;  %v1469_v21 = vld [vmem:[#allocation2 + $0x60] sm:$0xff]  ;;  %v1470_v58 = vld [vmem:[#allocation2 + $0x68] sm:$0xff]  ;;  %v1487_v49 = vld [vmem:[#allocation2 + $0xf0] sm:$0xff] }
 0x670   :  { %v3154_v10 = vadd.f32 %v1610_v36, %v1609_v17  ;;  %v1565_v45 = vmul.f32 %v1485_v59, %v3130_v5  ;;  %v1456_v38 = vmax.f32 %v1439_v50, 0.0  ;;  %v3161_v7 = vadd.f32 %v1564_v27, %v1563_v20  ;;  %v3515_v19 = vld [vmem:[#allocation47_spill] sm:$0xff]  ;;  %v3516_v62 = vld [vmem:[#allocation48_spill] sm:$0xff] }
 0x671   :  { %1720 = vadd.xlane.f32.xlu0 %v3093_v30  ;;  %1672 = vadd.xlane.f32.xlu1 %v3100_v60  ;;  %v3163_v48 = vadd.f32 %v1548_v9, %v1547_v39  ;;  %v1566_v28 = vmul.f32 %v1486_v0, %v3141_v16  ;;  %v1680_v8 = vadd.f32 %v1580_v55, %v1579_v13  ;;  %v3517_v50 = vld [vmem:[#allocation51_spill] sm:$0xff]  ;;  %v3518_v17 = vld [vmem:[#allocation52_spill] sm:$0xff]  ;;  %v1519_v39 = vld [vmem:[#allocation2 + $0x1f0] sm:$0xff] }
 0x672   :  { %v1595_v42 = vmul.f32 %v1451_v18, %v3515_v19  ;;  %v1596_v23 = vmul.f32 %v1452_v56, %v3516_v62  ;;  %v1581_v51 = vmul.f32 %v1501_v32, %v3130_v5  ;;  %v1582_v60 = vmul.f32 %v1502_v34, %v3141_v16  ;;  %v1472_v36 = vld [vmem:[#allocation2 + $0x78] sm:$0xff]  ;;  %v1503_v32 = vld [vmem:[#allocation2 + $0x170] sm:$0xff] }
 0x673   :  { %v1659_v30 = vadd.f32 %v1566_v28, %v1565_v45  ;;  %v1611_v4 = vmul.f32 %v1451_v18, %v3517_v50  ;;  %v1612_v59 = vmul.f32 %v1452_v56, %v3518_v17  ;;  %v1597_v0 = vmul.f32 %v1517_v63, %v3130_v5  ;;  %v1488_v40 = vld [vmem:[#allocation2 + $0xf8] sm:$0xff]  ;;  %v1535_v13 = vld [vmem:[#allocation2 + $0x270] sm:$0xff] }
 0x674   :  { %v1704_v20 = vadd.f32 %v1596_v23, %v1595_v42  ;;  %v1598_v22 = vmul.f32 %v1518_v52, %v3141_v16  ;;  %v1549_v27 = vmul.f32 %v1469_v21, %v3130_v5  ;;  %v1520_v29 = vld [vmem:[#allocation2 + $0x1f8] sm:$0xff]  ;;  %v1683_v18 = vadd.f32 %v1582_v60, %v1581_v51  ;;  %v1533_v42 = vld [vmem:[#allocation2 + $0x260] sm:$0xff] }
 0x675   :  { %1651 = vadd.xlane.f32.xlu0 %v3105_v61  ;;  %1696 = vadd.xlane.f32.xlu1 %v3107_v3  ;;  %v1728_v9 = vadd.f32 %v1612_v59, %v1611_v4  ;;  %v1550_v56 = vmul.f32 %v1470_v58, %v3141_v16  ;;  %v1504_v46 = vld [vmem:[#allocation2 + $0x178] sm:$0xff]  ;;  %v1551_v55 = vmul.f32 %v1471_v37, %v1455_v41  ;;  %v1534_v61 = vld [vmem:[#allocation2 + $0x268] sm:$0xff] }
 0x676   :  { %v1707_v47 = vadd.f32 %v1598_v22, %v1597_v0  ;;  %v1552_v45 = vmul.f32 %v1472_v36, %v1456_v38  ;;  %v1567_v34 = vmul.f32 %v1487_v49, %v1455_v41  ;;  %v1536_v28 = vld [vmem:[#allocation2 + $0x278] sm:$0xff]  ;;  %v1568_v52 = vmul.f32 %v1488_v40, %v1456_v38 }
 0x677   :  { %v1635_v63 = vadd.f32 %v1550_v56, %v1549_v27  ;;  %v1599_v21 = vmul.f32 %v1519_v39, %v1455_v41  ;;  %v1600_v19 = vmul.f32 %v1520_v29, %v1456_v38  ;;  %v1583_v3 = vmul.f32 %v1503_v32, %v1455_v41 }
 0x678   :  { %v1638_v62 = vadd.f32 %v1552_v45, %v1551_v55  ;;  %v1584_v23 = vmul.f32 %v1504_v46, %v1456_v38  ;;  %v1615_v51 = vmul.f32 %v1535_v13, %v1455_v41  ;;  %v1662_v58 = vadd.f32 %v1568_v52, %v1567_v34 }
 0x679   :  { %1675 = vadd.xlane.f32.xlu0 %v3110_v57  ;;  %1627 = vadd.xlane.f32.xlu1 %v3118_v11  ;;  %v1710_v60 = vadd.f32 %v1600_v19, %v1599_v21  ;;  %v1616_v50 = vmul.f32 %v1536_v28, %v1456_v38  ;;  %v1613_v17 = vmul.f32 %v1533_v42, %v3130_v5  ;;  %v3194_v57 = vld [vmem:[%s3359_s8] sm:$0x1]  ;;  %s2253_s8 = smov 124  }
 0x67a   :  { %v1686_v4 = vadd.f32 %v1584_v23, %v1583_v3  ;;  %v1614_v59 = vmul.f32 %v1534_v61, %v3141_v16  ;;  %v3198_v11 = vadd.f32 %v2993_v6, %v3194_v57 }
 0x67b   :  { %v1734_v37 = vadd.f32 %v1616_v50, %v1615_v51 }
 0x67c   :  { %v1731_v36 = vadd.f32 %v1614_v59, %v1613_v17 }
 0x67d   :  { %1630 = vadd.xlane.f32.xlu0 %v3123_v44  ;;  %1699 = vadd.xlane.f32.xlu1 %v3126_v1  ;;  %v1124_v44 = vsel %vm1123_vm0, %v3198_v11, -inf }
 0x681   :  { %1678 = vadd.xlane.f32.xlu0 %v3132_v35  ;;  %1723 = vadd.xlane.f32.xlu1 %v3137_v24 }
 0x685   :  { %1702 = vadd.xlane.f32.xlu0 %v3144_v12  ;;  %1654 = vadd.xlane.f32.xlu1 %v3147_v25 }
 0x689   :  { %1726 = vadd.xlane.f32.xlu0 %v3154_v10  ;;  %1657 = vadd.xlane.f32.xlu1 %v3161_v7 }
 0x68d   :  { %1633 = vadd.xlane.f32.xlu0 %v3163_v48  ;;  %1681 = vadd.xlane.f32.xlu1 %v1680_v8 }
 0x691   :  { %1660 = vadd.xlane.f32.xlu0 %v1659_v30  ;;  %1705 = vadd.xlane.f32.xlu1 %v1704_v20 }
 0x695   :  { %1684 = vadd.xlane.f32.xlu0 %v1683_v18  ;;  %1729 = vadd.xlane.f32.xlu1 %v1728_v9 }
 0x699   :  { %1708 = vadd.xlane.f32.xlu0 %v1707_v47  ;;  %1636 = vadd.xlane.f32.xlu1 %v1635_v63 }
 0x69d   :  { %1639 = vadd.xlane.f32.xlu0 %v1638_v62  ;;  %1663 = vadd.xlane.f32.xlu1 %v1662_v58 }
 0x6a1   :  { %1711 = vadd.xlane.f32.xlu0 %v1710_v60  ;;  %1687 = vadd.xlane.f32.xlu1 %v1686_v4 }
 0x6a5   :  { %1735 = vadd.xlane.f32.xlu0 %v1734_v37  ;;  %1732 = vadd.xlane.f32.xlu1 %v1731_v36 }
 0x6a9   :  { %1125 = vmax.xlane.f32.xlu1 %v1124_v44 }
 0x6e6   :  { %v1691_v1 = vpop.xlane.xlu0 %1690  ;;  %v1619_v5 = vpop.xlane.xlu1 %1618 }
 0x6e7   :  { %v1897_v28 = vrot.slane %v1691_v1, %v2850_v33  ;;  %v1780_v63 = vrot.slane %v1619_v5, %v2850_v33 }
 0x6ea   :  { %v3202_v35 = vpop.xlane.xlu0 %1714  ;;  %v1643_v24 = vpop.xlane.xlu1 %1642 }
 0x6eb   :  { %v1936_v52 = vrot.slane %v3202_v35, %v2850_v33  ;;  %v1819_v21 = vrot.slane %v1643_v24, %v2850_v33 }
 0x6ee   :  { %v1622_v16 = vpop.xlane.xlu0 %1621  ;;  %v1667_v12 = vpop.xlane.xlu1 %1666 }
 0x6ef   :  { %v1784_v55 = vrot.slane %v1622_v16, %v2844_v2  ;;  %v1858_v51 = vrot.slane %v1667_v12, %v2850_v33 }
 0x6f1   :  { %v1785_v23 = vsel %vm839_vm5, %v1784_v55, %v1780_v63 }
 0x6f2   :  { %v1646_v25 = vpop.xlane.xlu0 %1645  ;;  %v1694_v41 = vpop.xlane.xlu1 %1693 }
 0x6f3   :  { %v1823_v45 = vrot.slane %v1646_v25, %v2844_v2  ;;  %v1901_v34 = vrot.slane %v1694_v41, %v2844_v2 }
 0x6f5   :  { %v1824_v50 = vsel %vm839_vm5, %v1823_v45, %v1819_v21  ;;  %v1902_v4 = vsel %vm839_vm5, %v1901_v34, %v1897_v28 }
 0x6f6   :  { %v1670_v10 = vpop.xlane.xlu0 %1669  ;;  %v3204_v38 = vpop.xlane.xlu1 %1717 }
 0x6f7   :  { %v1862_v19 = vrot.slane %v1670_v10, %v2844_v2  ;;  %v1940_v37 = vrot.slane %v3204_v38, %v2844_v2 }
 0x6f9   :  { %v1863_v5 = vsel %vm839_vm5, %v1862_v19, %v1858_v51 }
 0x6fa   :  { %v1649_v6 = vpop.xlane.xlu0 %1648  ;;  %v1625_v7 = vpop.xlane.xlu1 %1624 }
 0x6fb   :  { %v1828_v42 = vrot.slane %v1649_v6, %v2856_v31  ;;  %v1789_v61 = vrot.slane %v1625_v7, %v2856_v31 }
 0x6fd   :  { %v1829_v24 = vsel %vm846_vm6, %v1828_v42, %v1824_v50  ;;  %v1790_v16 = vsel %vm846_vm6, %v1789_v61, %v1785_v23 }
 0x6fe   :  { %v3206_v48 = vpop.xlane.xlu0 %1720  ;;  %v1673_v8 = vpop.xlane.xlu1 %1672 }
 0x6ff   :  { %v1867_v58 = vrot.slane %v1673_v8, %v2856_v31  ;;  %v1945_v10 = vrot.slane %v3206_v48, %v2856_v31 }
 0x701   :  { %v1868_v2 = vsel %vm846_vm6, %v1867_v58, %v1863_v5 }
 0x702   :  { %v1652_v30 = vpop.xlane.xlu0 %1651  ;;  %v1697_v49 = vpop.xlane.xlu1 %1696 }
 0x703   :  { %v1833_v60 = vrot.slane %v1652_v30, %v2861_v15  ;;  %v1906_v17 = vrot.slane %v1697_v49, %v2856_v31 }
 0x705   :  { %v1834_v38 = vsel %vm853_vm7, %v1833_v60, %v1829_v24  ;;  %v1907_v7 = vsel %vm846_vm6, %v1906_v17, %v1902_v4  ;;  %v1941_v17 = vsel %vm839_vm5, %v1940_v37, %v1936_v52  ;;  %vm3523_vm5 = vmmov %vm3519_vm1 }
 0x706   :  { %v1676_v20 = vpop.xlane.xlu0 %1675  ;;  %v1628_v0 = vpop.xlane.xlu1 %1627 }
 0x707   :  { %v1794_v59 = vrot.slane %v1628_v0, %v2861_v15  ;;  %v1872_v36 = vrot.slane %v1676_v20, %v2861_v15 }
 0x709   :  { %v1795_v8 = vsel %vm853_vm7, %v1794_v59, %v1790_v16  ;;  %v1873_v20 = vsel %vm853_vm7, %v1872_v36, %v1868_v2  ;;  %v1946_v36 = vsel %vm846_vm6, %v1945_v10, %v1941_v17  ;;  %vm1140_vm6 = vcmask 0  }
 0x70a   :  { %v1631_v22 = vpop.xlane.xlu0 %1630  ;;  %v3208_v27 = vpop.xlane.xlu1 %1699 }
 0x70b   :  { %v1799_v44 = vrot.slane %v1631_v22, %v2865_v14  ;;  %v1911_v31 = vrot.slane %v3208_v27, %v2861_v15 }
 0x70d   :  { %v1800_v0 = vsel %vm3519_vm1, %v1799_v44, %v1795_v8  ;;  %v1912_v21 = vsel %vm853_vm7, %v1911_v31, %v1907_v7 }
 0x70e   :  { %v3210_v40 = vpop.xlane.xlu0 %1678  ;;  %v3212_v39 = vpop.xlane.xlu1 %1723 }
 0x70f   :  { %v1877_v22 = vrot.slane %v3210_v40, %v2865_v14  ;;  %v1950_v19 = vrot.slane %v3212_v39, %v2861_v15 }
 0x711   :  { %v1878_v61 = vsel %vm3521_vm3, %v1877_v22, %v1873_v20  ;;  %v1951_v5 = vsel %vm853_vm7, %v1950_v19, %v1946_v36 }
 0x712   :  { %v3214_v29 = vpop.xlane.xlu0 %1702  ;;  %v1655_v18 = vpop.xlane.xlu1 %1654 }
 0x713   :  { %v1838_v1 = vrot.slane %v1655_v18, %v2865_v14  ;;  %v1916_v18 = vrot.slane %v3214_v29, %v2865_v14 }
 0x715   :  { %v1839_v48 = vsel %vm3520_vm2, %v1838_v1, %v1834_v38  ;;  %v1917_v23 = vsel %vm3522_vm4, %v1916_v18, %v1912_v21 }
 0x716   :  { %v3216_v9 = vpop.xlane.xlu0 %1726  ;;  %v1658_v56 = vpop.xlane.xlu1 %1657 }
 0x717   :  { %v1843_v12 = vrot.slane %v1658_v56, %v2867_v53 }
 0x719   :  { %v1844_v56 = vsel %vm867_vm9, %v1843_v12, %v1839_v48 }
 0x71a   :  { %v1634_v32 = vpop.xlane.xlu0 %1633  ;;  %v3218_v46 = vpop.xlane.xlu1 %1681 }
 0x71b   :  { %v1804_v6 = vrot.slane %v1634_v32, %v2867_v53  ;;  %v1882_v32 = vrot.slane %v3218_v46, %v2867_v53 }
 0x71d   :  { %v1805_v45 = vsel %vm867_vm9, %v1804_v6, %v1800_v0  ;;  %v1883_v50 = vsel %vm867_vm9, %v1882_v32, %v1878_v61 }
 0x71e   :  { %v1661_v13 = vpop.xlane.xlu0 %1660  ;;  %v3220_v47 = vpop.xlane.xlu1 %1705 }
 0x71f   :  { %v1848_v30 = vrot.slane %v1661_v13, %v2852_v43  ;;  %v1921_v27 = vrot.slane %v3220_v47, %v2867_v53 }
 0x721   :  { %v1849_v40 = vsel %vm874_vm10, %v1848_v30, %v1844_v56  ;;  %v1922_v4 = vsel %vm867_vm9, %v1921_v27, %v1917_v23 }
 0x722   :  { %v3233_v62 = vpop.xlane.xlu0 %1684  ;;  %v3235_v3 = vpop.xlane.xlu1 %1729 }
 0x723   :  { %v1887_v29 = vrot.slane %v3233_v62, %v2852_v43  ;;  %v1955_v62 = vrot.slane %v3216_v9, %v2865_v14  ;;  %v1960_v14 = vrot.slane %v3235_v3, %v2867_v53 }
 0x725   :  { %v1888_v59 = vsel %vm874_vm10, %v1887_v29, %v1883_v50  ;;  %v1956_v52 = vsel %vm3523_vm5, %v1955_v62, %v1951_v5 }
 0x726   :  { %v1709_v25 = vpop.xlane.xlu0 %1708  ;;  %v1637_v41 = vpop.xlane.xlu1 %1636  ;;  %v1961_v16 = vsel %vm867_vm9, %v1960_v14, %v1956_v52 }
 0x727   :  { %v1809_v49 = vrot.slane %v1637_v41, %v2852_v43  ;;  %v1926_v63 = vrot.slane %v1709_v25, %v2852_v43 }
 0x729   :  { %v1810_v46 = vsel %vm874_vm10, %v1809_v49, %v1805_v45  ;;  %v1927_v9 = vsel %vm874_vm10, %v1926_v63, %v1922_v4 }
 0x72a   :  { %v1640_v13 = vpop.xlane.xlu0 %1639  ;;  %v1664_v55 = vpop.xlane.xlu1 %1663 }
 0x72b   :  { %v1814_v34 = vrot.slane %v1640_v13, %v2854_v54  ;;  %v1853_v28 = vrot.slane %v1664_v55, %v2854_v54 }
 0x72d   :  { %v1815_v47 = vsel %vm881_vm11, %v1814_v34, %v1810_v46  ;;  %v1854_v42 = vsel %vm881_vm11, %v1853_v28, %v1849_v40 }
 0x72e   :  { %v1972_v51 = vsel %vm1039_vm12, %v1854_v42, %v1815_v47  ;;  %v1712_v58 = vpop.xlane.xlu0 %1711  ;;  %v1688_v60 = vpop.xlane.xlu1 %1687 }
 0x72f   :  { %v1931_v15 = vrot.slane %v1712_v58, %v2854_v54  ;;  %v1892_v39 = vrot.slane %v1688_v60, %v2854_v54 }
 0x731   :  { %v1932_v44 = vsel %vm881_vm11, %v1931_v15, %v1927_v9  ;;  %v1893_v1 = vsel %vm881_vm11, %v1892_v39, %v1888_v59 }
 0x732   :  { %v1973_v24 = vsel %vm1041_vm13, %v1893_v1, %v1972_v51  ;;  %v1736_v33 = vpop.xlane.xlu0 %1735  ;;  %v1733_v35 = vpop.xlane.xlu1 %1732 }
 0x733   :  { %v1970_v37 = vrot.slane %v1736_v33, %v2854_v54  ;;  %v1965_v53 = vrot.slane %v1733_v35, %v2852_v43  ;;  %v1974_v3 = vsel %vm1043_vm14, %v1932_v44, %v1973_v24 }
 0x735   :  { %v1966_v12 = vsel %vm874_vm10, %v1965_v53, %v1961_v16 }
 0x736   :  { %v1971_v25 = vsel %vm881_vm11, %v1970_v37, %v1966_v12  ;;  %v1126_v41 = vpop.xlane.xlu1 %1125 }
 0x737   :  { %v1127_v10 = vsub.f32 %v3198_v11, %v1126_v41  ;;  %v1975_v2 = vsel %vm1045_vm15, %v1971_v25, %v1974_v3 }
 0x738   :  { %2131 = vmatpush3.xpose.msk.msra.mxu1 %vm1047_vm8, %v1975_v2 }
 0x739   :  { %v1128_v38 = vmul.f32 1.442695, %v1127_v10 }
 0x73b   :  { %2176 = vpow2.f32 %v1128_v38  ;;  %2133 = vmatmul.mubr.msk.f32.vlgmr.msra.gmra.mrb[26].mxu1 %vm1047_vm8, %v2252_v26 }
 0x745   :  { %v2177_v43 = vpop.eup %2176 }
 0x746   :  { %v1130_v54 = vsel %vm1123_vm0, %v2177_v43, 0.0 }
 0x747   :  { %1131 = vadd.xlane.f32.xlu1 %v1130_v54 }
 0x758   :  { %1137 = vrot.lane.b32.xlu1 %v3198_v11, %s2253_s8 }
 0x7d4   :  { %v1132_v6 = vpop.xlane.xlu1 %1131 }
 0x7d5   :  { %2178 = vrcp.f32 %v1132_v6 }
 0x7d8   :  { %v1138_v7 = vpop.permute.xlu1 %1137 }
 0x7d9   :  { %1141 = vst.msk [vmem:[%s3361_s10] sm:$0x1] %vm1140_vm6, %v1138_v7 }
 0x7df   :  { %v2179_v8 = vpop.eup %2178 }
 0x7e0   :  { %v1134_v30 = vmul.f32 %v2179_v8, %v2177_v43 }
 0x7e2   :  { %1135 = vst.msk [vmem:[#allocation5] sm:$0x1] %vm1123_vm0, %v1134_v30 }
 0x80e   :  { %v2044_v26 = vpop.f32.mrb[26].mxu1 }
 0x80f   :  { %v2045_v49 = vadd.f32 %v2044_v26, %v3194_v57  ;;  %v2134_v20 = vpop.f32.mrb[27].mxu1 }
 0x811   :  { %v2048_v0 = vsel %vm1123_vm0, %v2045_v49, -inf }
 0x812   :  { %2049 = vmax.xlane.f32.xlu0 %v2048_v0 }
 0x89f   :  { %v2050_v11 = vpop.xlane.xlu0 %2049 }
 0x8a0   :  { %v2051_v31 = vsub.f32 %v2045_v49, %v2050_v11 }
 0x8a2   :  { %v2052_v48 = vmul.f32 1.442695, %v2051_v31 }
 0x8a4   :  { %2180 = vpow2.f32 %v2052_v48 }
 0x8ae   :  { %v2181_v22 = vpop.eup %2180 }
 0x8af   :  { %v2054_v18 = vsel %vm1123_vm0, %v2181_v22, 0.0 }
 0x8b0   :  { %2055 = vadd.xlane.f32.xlu0 %v2054_v18 }
 0x8c6   :  { %2061 = vrot.lane.b32.xlu0 %v2045_v49, %s2253_s8 }
 0x93d   :  { %v2056_v56 = vpop.xlane.xlu0 %2055 }
 0x93e   :  { %2182 = vrcp.f32 %v2056_v56 }
 0x941   :  { %v2062_v32 = vpop.permute.xlu0 %2061 }
 0x942   :  { %2064 = vst.msk [vmem:[%s3361_s10 + $0x1] sm:$0x1] %vm1140_vm6, %v2062_v32 }
 0x948   :  { %v2183_v57 = vpop.eup %2182 }
 0x949   :  { %v2058_v13 = vmul.f32 %v2183_v57, %v2181_v22 }
 0x94b   :  { %2059 = vst.msk [vmem:[#allocation5 + $0x1] sm:$0x1] %vm1123_vm0, %v2058_v13 }
 0x94c   :  { %2231 = shalt.err (!%p2228_p12)
}
 0x94d   :  { %s2232_s26 = scalar_lea.hbm %s3360_s9, 32 }
 0x94e   :  { %p2233_p13 = scmp.ne.s32.totalorder %s3360_s9, %s2232_s26  ;;  %p2236_p0 = scmp.lt.u32.totalorder %s2232_s26, %s3360_s9 }
 0x950   :  { %p2238_p1 = pnand %p2236_p0, %p2233_p13 }
 0x952   :  { %2241 = shalt.err (!%p2238_p1)
}
 0x953   :  { %2074 = dma.vmem_to_hbm [thread:$0]  %s2072_s22, 32, %s3360_s9, [#allocation4]  }
 0x954   :  { %2244 = dma.done.wait [#allocation4], 32  }
 0x955   :  { %2245 = vsyncadd [#allocation4], 4294967264 }
 0x956   :  { %2082 = vsyncpa [#allocation3], 1 }
 0x957   :  { %2083 = vsyncpa [#allocation4], 1 }

</bundles_post_ra>
